<compile_context>
chip_gen: v6e
topology: v6e:2x2x1
jax: 0.10.0
libtpu: 0.0.40
codegen_flags: <defaults>
</compile_context>

<pallas_src>
import functools

import numpy as np
import jax
import jax.numpy as jnp
from jax import lax
from jax.experimental import pallas as pl
from jax.experimental.pallas import tpu as pltpu


# Packed loss-vector layout (per decoder layer).
_IDX_OBJ_CE, _IDX_CLS_ERR, _IDX_CARD, _IDX_VERB = 0, 1, 2, 3
_IDX_SUB_L1, _IDX_OBJ_L1, _IDX_SUB_GIOU, _IDX_OBJ_GIOU = 4, 5, 6, 7
_N_LOSSES = 8


# ---------------------------------------------------------------------------
# Fused loss kernel: ONE step computes every loss for every decoder layer.
#   obj logits [L, B, Q, C]   tgt classes [L, B, Q]   tgt lengths [1, B]
#   verb logits/targets [L, N, V]   box slab [L, 17, N]   num_interactions [1, 1]
#   output [L, 8] (layer-major packed loss scalars)
# ---------------------------------------------------------------------------
def _make_fused_kernel(L, B, Q, C1, N, V, noobj_idx, eos_coef, verb_loss_type):
    def kernel(obj_ref, tgtc_ref, tlen_ref, vlg_ref, vtg_ref, slab_ref, nint_ref, out_ref):
        f32 = jnp.float32

        # ------------------ object-class losses ------------------
        logits = obj_ref[...].astype(f32)                   # [L, B, Q, C]
        tgt = tgtc_ref[...]                                 # [L, B, Q] int32
        tlen = tlen_ref[...]                                # [1, B]
        ni = nint_ref[...]                                  # [1, 1]

        cls_ids = lax.broadcasted_iota(jnp.int32, (L, B, Q, C1), 3)
        onehot = (cls_ids == tgt[..., None]).astype(f32)    # [L, B, Q, C]

        # F.cross_entropy(logits.transpose(1,2), target, weight), reduction='mean'
        mx = jnp.max(logits, axis=-1, keepdims=True)
        lse = mx[..., 0] + jnp.log(jnp.sum(jnp.exp(logits - mx), axis=-1))   # [L,B,Q]
        tgt_logit = jnp.sum(logits * onehot, axis=-1)                        # [L,B,Q]
        nll = lse - tgt_logit
        # empty_weight is ones with weight[noobj] = eos_coef by construction.
        w = jnp.where(tgt == noobj_idx, eos_coef, 1.0).astype(f32)           # [L,B,Q]
        ce_num = jnp.sum(jnp.sum(nll * w, axis=2), axis=1, keepdims=True)    # [L,1]
        ce_den = jnp.sum(jnp.sum(w, axis=2), axis=1, keepdims=True)
        loss_obj_ce = ce_num / ce_den

        # torch argmax semantics (first maximal index)
        is_max = logits == mx
        first_max = jnp.min(jnp.where(is_max, cls_ids, C1), axis=-1)         # [L,B,Q]

        matched = (tgt != noobj_idx).astype(f32)                             # [L,B,Q]
        correct = (first_max == tgt).astype(f32) * matched
        n_matched = jnp.sum(jnp.sum(matched, axis=2), axis=1, keepdims=True)  # [L,1]
        n_correct = jnp.sum(jnp.sum(correct, axis=2), axis=1, keepdims=True)
        acc = 100.0 * n_correct / jnp.maximum(n_matched, 1.0)
        obj_class_error = 100.0 - acc                                         # [L,1]

        not_noobj = (first_max != noobj_idx).astype(f32)
        card_pred = jnp.sum(not_noobj, axis=2)                                # [L,B]
        card_err = jnp.sum(jnp.abs(card_pred - tlen), axis=1,
                           keepdims=True) / float(B)                          # [L,1]

        # ------------------ verb classification loss ------------------
        x = vlg_ref[...].astype(f32)                        # [L, N, V]
        gt = vtg_ref[...]                                   # [L, N, V] f32 (0/1)

        ax = jnp.abs(x)
        t = jnp.exp(-ax)                                    # shared transcendental
        lg = jnp.log(1.0 + t)                               # log1p(exp(-|x|))
        sp_pos = jnp.maximum(x, 0.0) + lg                   # softplus(x)  = -log(1 - sigmoid)
        sp_neg = jnp.maximum(-x, 0.0) + lg                  # softplus(-x) = -log(sigmoid)

        if verb_loss_type == 'focal':
            inv = pl.reciprocal(1.0 + t, approx=True)       # EUP slot
            pred = jnp.where(x >= 0.0, 1.0, t) * inv        # sigmoid(x)
            one_m_pred = jnp.where(x >= 0.0, t, 1.0) * inv  # 1 - sigmoid(x)
            pos = (gt == 1.0).astype(f32)
            neg = (gt < 1.0).astype(f32)
            pos_loss = (-sp_neg) * jnp.square(one_m_pred) * pos
            neg_loss = (-sp_pos) * jnp.square(pred) * neg
            num_pos = jnp.sum(jnp.sum(pos, axis=2), axis=1, keepdims=True)    # [L,1]
            ps = jnp.sum(jnp.sum(pos_loss, axis=2), axis=1, keepdims=True)
            ns = jnp.sum(jnp.sum(neg_loss, axis=2), axis=1, keepdims=True)
            loss_verb = jnp.where(num_pos == 0.0, -ns,
                                  -(ps + ns) / jnp.maximum(num_pos, 1.0))
        else:  # 'bce' — numerically-stable BCE-with-logits, mean over all elements
            bce = jnp.maximum(x, 0.0) - x * gt + lg
            loss_verb = jnp.sum(jnp.sum(bce, axis=2), axis=1,
                                keepdims=True) / float(N * V)

        # ------------------ sub/obj box losses ------------------
        slab = slab_ref[...]                                # [L, 17, N]
        ps_ = slab[:, 0:4, :]                               # pred sub boxes (cxcywh)
        po_ = slab[:, 4:8, :]                               # pred obj boxes
        ts_ = slab[:, 8:12, :]                              # target sub boxes
        to_ = slab[:, 12:16, :]                             # target obj boxes
        bm = slab[:, 16:17, :]                              # matched-row mask [L,1,N]

        l1_sub = jnp.sum(jnp.sum(jnp.abs(ps_ - ts_) * bm, axis=1, keepdims=True),
                         axis=2) / ni                                        # [L,1]
        exist = jnp.max((to_ != 0.0).astype(f32), axis=1, keepdims=True) * bm
        n_exist = jnp.sum(exist, axis=2)                                      # [L,1]
        l1_obj = jnp.sum(jnp.sum(jnp.abs(po_ - to_) * exist, axis=1, keepdims=True),
                         axis=2) / (n_exist + 1e-4)

        def _xyxy(b):
            cx, cy, w_, h_ = b[:, 0:1, :], b[:, 1:2, :], b[:, 2:3, :], b[:, 3:4, :]
            return cx - 0.5 * w_, cy - 0.5 * h_, cx + 0.5 * w_, cy + 0.5 * h_

        def _paired_giou(b1, b2):
            x10, y10, x11, y11 = _xyxy(b1)
            x20, y20, x21, y21 = _xyxy(b2)
            a1 = (x11 - x10) * (y11 - y10)
            a2 = (x21 - x20) * (y21 - y20)
            iw = jnp.maximum(jnp.minimum(x11, x21) - jnp.maximum(x10, x20), 0.0)
            ih = jnp.maximum(jnp.minimum(y11, y21) - jnp.maximum(y10, y20), 0.0)
            inter = iw * ih
            union = a1 + a2 - inter
            # eps keeps masked all-zero rows finite; slight deviation vs torchvision.
            iou = inter * pl.reciprocal(union + 1e-7, approx=True)
            ew_ = jnp.maximum(jnp.maximum(x11, x21) - jnp.minimum(x10, x20), 0.0)
            eh_ = jnp.maximum(jnp.maximum(y11, y21) - jnp.minimum(y10, y20), 0.0)
            ec = ew_ * eh_
            return iou - (ec - union) * pl.reciprocal(ec + 1e-7, approx=True)  # [L,1,N]

        giou_sub = jnp.sum((1.0 - _paired_giou(ps_, ts_)) * bm, axis=2) / ni
        giou_obj = jnp.sum((1.0 - _paired_giou(po_, to_)) * exist, axis=2) / (n_exist + 1e-4)

        # ------------------ packed output: one [L, 8] store ------------------
        out_ref[...] = jnp.concatenate(
            [loss_obj_ce, obj_class_error, card_err, loss_verb,
             l1_sub, l1_obj, giou_sub, giou_obj], axis=1)

    return kernel


# ---------------------------------------------------------------------------
# Builder: one jitted callable per static configuration (single grid-less step)
# ---------------------------------------------------------------------------
@functools.lru_cache(maxsize=None)
def _get_fused_fn(L, B, Q, C1, V, noobj_idx, eos_coef, verb_loss_type):
    N = B * Q
    kernel = _make_fused_kernel(L, B, Q, C1, N, V, noobj_idx, eos_coef, verb_loss_type)

    # No grid: every input is a whole-array VMEM block (full-dims BlockSpec exception),
    # total working set << VMEM even at real QPIC sizes (L=7, Q=100).
    fused_call = pl.pallas_call(
        kernel,
        out_shape=jax.ShapeDtypeStruct((L, _N_LOSSES), jnp.float32),
    )

    @jax.jit
    def run(obj_list, verb_list, psub_list, pobj_list,
            tgt_cls, verb_tgt, tsub, tobj, tgt_len, num_int):
        # Stack / reshape / transpose all layers inside ONE jit (fused pre-kernel chain).
        obj = jnp.stack(obj_list).astype(jnp.float32)                       # [L,B,Q,C]
        vlg = jnp.stack(verb_list).astype(jnp.float32).reshape(L, N, V)     # [L,N,V]
        vtg = verb_tgt.astype(jnp.float32).reshape(L, N, V)                 # int8 -> f32

        def cm(x):                                                          # -> [L,4,N]
            return jnp.transpose(x.astype(jnp.float32).reshape(L, N, 4), (0, 2, 1))

        tgt_cls = tgt_cls.astype(jnp.int32)
        bm = (tgt_cls.reshape(L, 1, N) != noobj_idx).astype(jnp.float32)
        slab = jnp.concatenate(                                             # [L,17,N]
            [cm(jnp.stack(psub_list)), cm(jnp.stack(pobj_list)),
             cm(tsub), cm(tobj), bm], axis=1)

        tlen = tgt_len.astype(jnp.float32).reshape(1, B)
        ni = num_int.astype(jnp.float32).reshape(1, 1)

        return fused_call(obj, tgt_cls, tlen, vlg, vtg, slab, ni)

    return run


# ---------------------------------------------------------------------------
# Matcher (glue)
# ---------------------------------------------------------------------------
def identity_matcher(outputs, targets):
    # TODO(synk): the Hungarian (scipy linear_sum_assignment) matcher from QPIC has no
    # clean Pallas equivalent; a deterministic identity assignment is used instead.
    return [(np.arange(len(t['obj_labels']), dtype=np.int64),
             np.arange(len(t['obj_labels']), dtype=np.int64)) for t in targets]


# ---------------------------------------------------------------------------
# SetCriterionHOI (JAX/Pallas)
# ---------------------------------------------------------------------------
class SetCriterionHOI:
    def __init__(self, num_obj_classes, num_queries, num_verb_classes, matcher,
                 weight_dict, eos_coef, losses, verb_loss_type):
        assert verb_loss_type in ('bce', 'focal')
        self.num_obj_classes = num_obj_classes
        self.num_queries = num_queries
        self.num_verb_classes = num_verb_classes
        self.matcher = matcher
        self.weight_dict = weight_dict
        self.eos_coef = eos_coef
        self.losses = losses
        self.verb_loss_type = verb_loss_type
        ew = np.ones(num_obj_classes + 1, np.float32)
        ew[-1] = eos_coef
        self.empty_weight = ew   # kept for fidelity; kernel bakes eos_coef directly

    # --- host-side target densification (once per forward, all layers) --------
    def _densify_targets(self, layer_indices, targets, B, Q, V):
        L = len(layer_indices)
        tgt_cls = np.full((L, B, Q), self.num_obj_classes, np.int32)
        # verb labels are binary multi-hot in QPIC -> int8 is exact and 4x fewer H2D bytes
        verb_tgt = np.zeros((L, B, Q, V), np.int8)
        tsub = np.zeros((L, B, Q, 4), np.float32)
        tobj = np.zeros((L, B, Q, 4), np.float32)
        for l, idxs in enumerate(layer_indices):
            for b, (src, tgt_i) in enumerate(idxs):
                src = np.asarray(src, dtype=np.int64)
                tgt_i = np.asarray(tgt_i, dtype=np.int64)
                if src.size == 0:
                    continue
                tgt_cls[l, b, src] = np.asarray(targets[b]['obj_labels'])[tgt_i]
                verb_tgt[l, b, src] = np.asarray(targets[b]['verb_labels'])[tgt_i].astype(np.int8)
                tsub[l, b, src] = np.asarray(targets[b]['sub_boxes'])[tgt_i]
                tobj[l, b, src] = np.asarray(targets[b]['obj_boxes'])[tgt_i]
        tgt_len = np.array([len(t['obj_labels']) for t in targets], np.float32)
        return tgt_cls, verb_tgt, tsub, tobj, tgt_len

    def _unpack_row(self, row, losses, suffix, include_class_error):
        out = {}
        for loss in losses:
            if loss == 'obj_labels':
                out['loss_obj_ce' + suffix] = row[_IDX_OBJ_CE]
                if include_class_error:
                    out['obj_class_error'] = row[_IDX_CLS_ERR]
            elif loss == 'obj_cardinality':
                out['obj_cardinality_error' + suffix] = row[_IDX_CARD]
            elif loss == 'verb_labels':
                out['loss_verb_ce' + suffix] = row[_IDX_VERB]
            elif loss == 'sub_obj_boxes':
                out['loss_sub_bbox' + suffix] = row[_IDX_SUB_L1]
                out['loss_obj_bbox' + suffix] = row[_IDX_OBJ_L1]
                out['loss_sub_giou' + suffix] = row[_IDX_SUB_GIOU]
                out['loss_obj_giou' + suffix] = row[_IDX_OBJ_GIOU]
            else:
                raise AssertionError(f'do you really want to compute {loss} loss?')
        return out

    def forward(self, outputs, targets):
        outputs_without_aux = {k: v for k, v in outputs.items() if k != 'aux_outputs'}

        layer_outputs = [outputs_without_aux]
        layer_indices = [self.matcher(outputs_without_aux, targets)]
        if 'aux_outputs' in outputs:
            for aux in outputs['aux_outputs']:
                layer_outputs.append(aux)
                layer_indices.append(self.matcher(aux, targets))
        L = len(layer_outputs)

        B, Q, C1 = outputs['pred_obj_logits'].shape
        V = outputs['pred_verb_logits'].shape[-1]

        num_interactions = sum(len(t['obj_labels']) for t in targets)
        num_interactions = max(float(num_interactions), 1.0)   # world size == 1

        tgt_cls, verb_tgt, tsub, tobj, tgt_len = \
            self._densify_targets(layer_indices, targets, B, Q, V)

        run = _get_fused_fn(L, B, Q, C1, V, self.num_obj_classes,
                            float(self.eos_coef), self.verb_loss_type)
        packed = run(
            tuple(o['pred_obj_logits'] for o in layer_outputs),
            tuple(o['pred_verb_logits'] for o in layer_outputs),
            tuple(o['pred_sub_boxes'] for o in layer_outputs),
            tuple(o['pred_obj_boxes'] for o in layer_outputs),
            jnp.asarray(tgt_cls), jnp.asarray(verb_tgt),
            jnp.asarray(tsub), jnp.asarray(tobj), jnp.asarray(tgt_len),
            jnp.asarray(num_interactions, jnp.float32))

        # one D2H pull for all L*8 scalars (layer 0 = main outputs, 1.. = aux_outputs)
        packed_np = np.asarray(jax.device_get(packed))

        losses = {}
        losses.update(self._unpack_row(packed_np[0], self.losses, '', True))
        for i in range(1, L):
            losses.update(self._unpack_row(packed_np[i], self.losses, f'_{i - 1}', False))
        return losses


# ---------------------------------------------------------------------------
# main
# ---------------------------------------------------------------------------
if __name__ == "__main__":
    B, Q = 2, 8
    num_obj_classes, num_verb_classes = 11, 10
    n_aux = 2

    key = jax.random.PRNGKey(0)

    def _make_layer(k):
        k1, k2, k3, k4 = jax.random.split(k, 4)
        return {
            'pred_obj_logits': jax.random.normal(k1, (B, Q, num_obj_classes + 1), jnp.float32),
            'pred_verb_logits': jax.random.normal(k2, (B, Q, num_verb_classes), jnp.float32),
            'pred_sub_boxes': jax.random.uniform(k3, (B, Q, 4), jnp.float32, 0.1, 0.8),
            'pred_obj_boxes': jax.random.uniform(k4, (B, Q, 4), jnp.float32, 0.1, 0.8),
        }

    keys = jax.random.split(key, n_aux + 1)
    outputs = _make_layer(keys[0])
    outputs['aux_outputs'] = [_make_layer(k) for k in keys[1:]]

    rng = np.random.RandomState(0)
    targets = []
    for bi, n in enumerate([3, 5]):
        obj_labels = rng.randint(0, num_obj_classes, size=n).astype(np.int64)
        verb_labels = (rng.rand(n, num_verb_classes) > 0.7).astype(np.float32)
        sub_boxes = np.stack([rng.uniform(0.2, 0.8, n), rng.uniform(0.2, 0.8, n),
                              rng.uniform(0.05, 0.3, n), rng.uniform(0.05, 0.3, n)],
                             axis=1).astype(np.float32)
        obj_boxes = np.stack([rng.uniform(0.2, 0.8, n), rng.uniform(0.2, 0.8, n),
                              rng.uniform(0.05, 0.3, n), rng.uniform(0.05, 0.3, n)],
                             axis=1).astype(np.float32)
        if bi == 1:
            obj_boxes[-1] = 0.0   # exercise the "no object box" exist-mask path
        targets.append({'obj_labels': obj_labels, 'verb_labels': verb_labels,
                        'sub_boxes': sub_boxes, 'obj_boxes': obj_boxes})

    weight_dict = {'loss_obj_ce': 1.0, 'loss_verb_ce': 1.0,
                   'loss_sub_bbox': 2.5, 'loss_obj_bbox': 2.5,
                   'loss_sub_giou': 1.0, 'loss_obj_giou': 1.0}
    criterion = SetCriterionHOI(num_obj_classes, Q, num_verb_classes, identity_matcher,
                                weight_dict, eos_coef=0.1,
                                losses=['obj_labels', 'obj_cardinality',
                                        'verb_labels', 'sub_obj_boxes'],
                                verb_loss_type='focal')

    losses = criterion.forward(outputs, targets)
    losses = {k: jax.block_until_ready(v) for k, v in losses.items()}
    assert len(losses) == 8 + n_aux * 7   # main layer logs obj_class_error too
    assert all(bool(jnp.isfinite(v)) for v in losses.values())
    print("KERNEL_OK")
</pallas_src>

<mosaic_0001>
module attributes {stable_mosaic.version = 11 : i64} {
  func.func @kernel(%arg0: memref<3x2x8x12xf32, #tpu.memory_space<vmem>>, %arg1: memref<3x2x8xi32, #tpu.memory_space<vmem>>, %arg2: memref<1x2xf32, #tpu.memory_space<vmem>>, %arg3: memref<3x16x10xf32, #tpu.memory_space<vmem>>, %arg4: memref<3x16x10xf32, #tpu.memory_space<vmem>>, %arg5: memref<3x17x16xf32, #tpu.memory_space<vmem>>, %arg6: memref<1x1xf32, #tpu.memory_space<vmem>>, %arg7: memref<3x8xf32, #tpu.memory_space<vmem>>) attributes {dimension_semantics = [], scalar_prefetch = 0 : i64, scratch_operands = 0 : i64, tpu.core_type = #tpu.core_type<tc>} {
    %c0 = arith.constant 0 : index
    %c0_0 = arith.constant 0 : index
    %c0_1 = arith.constant 0 : index
    %c0_2 = arith.constant 0 : index
    %0 = vector.load %arg0[%c0, %c0_0, %c0_1, %c0_2] : memref<3x2x8x12xf32, #tpu.memory_space<vmem>>, vector<3x2x8x12xf32>
    %c0_3 = arith.constant 0 : index
    %c0_4 = arith.constant 0 : index
    %c0_5 = arith.constant 0 : index
    %1 = vector.load %arg1[%c0_3, %c0_4, %c0_5] : memref<3x2x8xi32, #tpu.memory_space<vmem>>, vector<3x2x8xi32>
    %c0_6 = arith.constant 0 : index
    %c0_7 = arith.constant 0 : index
    %2 = vector.load %arg2[%c0_6, %c0_7] : memref<1x2xf32, #tpu.memory_space<vmem>>, vector<1x2xf32>
    %c0_8 = arith.constant 0 : index
    %c0_9 = arith.constant 0 : index
    %3 = vector.load %arg6[%c0_8, %c0_9] : memref<1x1xf32, #tpu.memory_space<vmem>>, vector<1x1xf32>
    %4 = tpu.iota {dimensions = array<i32: 3>} : vector<3x2x8x12xi32>
    %5 = vector.shape_cast %1 : vector<3x2x8xi32> to vector<3x2x8x1xi32>
    %6 = vector.broadcast %5 : vector<3x2x8x1xi32> to vector<3x2x8x12xi32>
    %7 = arith.cmpi eq, %4, %6 : vector<3x2x8x12xi32>
    %8 = arith.extui %7 : vector<3x2x8x12xi1> to vector<3x2x8x12xi32>
    %9 = arith.sitofp %8 : vector<3x2x8x12xi32> to vector<3x2x8x12xf32>
    %cst = arith.constant dense<0xFF800000> : vector<3x2x8xf32>
    %10 = vector.multi_reduction <maximumf>, %0, %cst [3] : vector<3x2x8x12xf32> to vector<3x2x8xf32>
    %11 = vector.shape_cast %10 : vector<3x2x8xf32> to vector<3x2x8x1xf32>
    %12 = vector.shape_cast %11 : vector<3x2x8x1xf32> to vector<3x2x8xf32>
    %13 = vector.broadcast %11 : vector<3x2x8x1xf32> to vector<3x2x8x12xf32>
    %14 = arith.subf %0, %13 : vector<3x2x8x12xf32>
    %15 = math.exp %14 : vector<3x2x8x12xf32>
    %cst_10 = arith.constant dense<0.000000e+00> : vector<3x2x8xf32>
    %16 = vector.multi_reduction <add>, %15, %cst_10 [3] : vector<3x2x8x12xf32> to vector<3x2x8xf32>
    %17 = math.log %16 : vector<3x2x8xf32>
    %18 = arith.addf %12, %17 : vector<3x2x8xf32>
    %19 = arith.mulf %0, %9 : vector<3x2x8x12xf32>
    %cst_11 = arith.constant dense<0.000000e+00> : vector<3x2x8xf32>
    %20 = vector.multi_reduction <add>, %19, %cst_11 [3] : vector<3x2x8x12xf32> to vector<3x2x8xf32>
    %21 = arith.subf %18, %20 : vector<3x2x8xf32>
    %c11_i32 = arith.constant 11 : i32
    %22 = vector.broadcast %c11_i32 : i32 to vector<3x2x8xi32>
    %23 = arith.cmpi eq, %1, %22 : vector<3x2x8xi32>
    %cst_12 = arith.constant 1.000000e-01 : f32
    %cst_13 = arith.constant 1.000000e+00 : f32
    %24 = vector.broadcast %cst_12 : f32 to vector<3x2x8xf32>
    %25 = vector.broadcast %cst_13 : f32 to vector<3x2x8xf32>
    %26 = arith.select %23, %24, %25 : vector<3x2x8xi1>, vector<3x2x8xf32>
    %27 = arith.mulf %21, %26 : vector<3x2x8xf32>
    %cst_14 = arith.constant dense<0.000000e+00> : vector<3x2xf32>
    %28 = vector.multi_reduction <add>, %27, %cst_14 [2] : vector<3x2x8xf32> to vector<3x2xf32>
    %cst_15 = arith.constant dense<0.000000e+00> : vector<3xf32>
    %29 = vector.multi_reduction <add>, %28, %cst_15 [1] : vector<3x2xf32> to vector<3xf32>
    %30 = vector.shape_cast %29 : vector<3xf32> to vector<3x1xf32>
    %cst_16 = arith.constant dense<0.000000e+00> : vector<3x2xf32>
    %31 = vector.multi_reduction <add>, %26, %cst_16 [2] : vector<3x2x8xf32> to vector<3x2xf32>
    %cst_17 = arith.constant dense<0.000000e+00> : vector<3xf32>
    %32 = vector.multi_reduction <add>, %31, %cst_17 [1] : vector<3x2xf32> to vector<3xf32>
    %33 = vector.shape_cast %32 : vector<3xf32> to vector<3x1xf32>
    %34 = arith.divf %30, %33 : vector<3x1xf32>
    %35 = vector.broadcast %11 : vector<3x2x8x1xf32> to vector<3x2x8x12xf32>
    %36 = arith.cmpf oeq, %0, %35 : vector<3x2x8x12xf32>
    %c12_i32 = arith.constant 12 : i32
    %37 = vector.broadcast %c12_i32 : i32 to vector<3x2x8x12xi32>
    %38 = arith.select %36, %4, %37 : vector<3x2x8x12xi1>, vector<3x2x8x12xi32>
    %cst_18 = arith.constant dense<2147483647> : vector<3x2x8xi32>
    %39 = vector.multi_reduction <minsi>, %38, %cst_18 [3] : vector<3x2x8x12xi32> to vector<3x2x8xi32>
    %c11_i32_19 = arith.constant 11 : i32
    %40 = vector.broadcast %c11_i32_19 : i32 to vector<3x2x8xi32>
    %41 = arith.cmpi ne, %1, %40 : vector<3x2x8xi32>
    %42 = arith.extui %41 : vector<3x2x8xi1> to vector<3x2x8xi32>
    %43 = arith.sitofp %42 : vector<3x2x8xi32> to vector<3x2x8xf32>
    %44 = arith.cmpi eq, %39, %1 : vector<3x2x8xi32>
    %45 = arith.extui %44 : vector<3x2x8xi1> to vector<3x2x8xi32>
    %46 = arith.sitofp %45 : vector<3x2x8xi32> to vector<3x2x8xf32>
    %47 = arith.mulf %46, %43 : vector<3x2x8xf32>
    %cst_20 = arith.constant dense<0.000000e+00> : vector<3x2xf32>
    %48 = vector.multi_reduction <add>, %43, %cst_20 [2] : vector<3x2x8xf32> to vector<3x2xf32>
    %cst_21 = arith.constant dense<0.000000e+00> : vector<3xf32>
    %49 = vector.multi_reduction <add>, %48, %cst_21 [1] : vector<3x2xf32> to vector<3xf32>
    %50 = vector.shape_cast %49 : vector<3xf32> to vector<3x1xf32>
    %cst_22 = arith.constant dense<0.000000e+00> : vector<3x2xf32>
    %51 = vector.multi_reduction <add>, %47, %cst_22 [2] : vector<3x2x8xf32> to vector<3x2xf32>
    %cst_23 = arith.constant dense<0.000000e+00> : vector<3xf32>
    %52 = vector.multi_reduction <add>, %51, %cst_23 [1] : vector<3x2xf32> to vector<3xf32>
    %53 = vector.shape_cast %52 : vector<3xf32> to vector<3x1xf32>
    %cst_24 = arith.constant 1.000000e+02 : f32
    %54 = vector.broadcast %cst_24 : f32 to vector<3x1xf32>
    %55 = arith.mulf %54, %53 : vector<3x1xf32>
    %cst_25 = arith.constant 1.000000e+00 : f32
    %56 = vector.broadcast %cst_25 : f32 to vector<3x1xf32>
    %57 = arith.maximumf %50, %56 : vector<3x1xf32>
    %58 = arith.divf %55, %57 : vector<3x1xf32>
    %cst_26 = arith.constant 1.000000e+02 : f32
    %59 = vector.broadcast %cst_26 : f32 to vector<3x1xf32>
    %60 = arith.subf %59, %58 : vector<3x1xf32>
    %c11_i32_27 = arith.constant 11 : i32
    %61 = vector.broadcast %c11_i32_27 : i32 to vector<3x2x8xi32>
    %62 = arith.cmpi ne, %39, %61 : vector<3x2x8xi32>
    %63 = arith.extui %62 : vector<3x2x8xi1> to vector<3x2x8xi32>
    %64 = arith.sitofp %63 : vector<3x2x8xi32> to vector<3x2x8xf32>
    %cst_28 = arith.constant dense<0.000000e+00> : vector<3x2xf32>
    %65 = vector.multi_reduction <add>, %64, %cst_28 [2] : vector<3x2x8xf32> to vector<3x2xf32>
    %66 = vector.broadcast %2 : vector<1x2xf32> to vector<3x2xf32>
    %67 = arith.subf %65, %66 : vector<3x2xf32>
    %68 = math.absf %67 : vector<3x2xf32>
    %cst_29 = arith.constant dense<0.000000e+00> : vector<3xf32>
    %69 = vector.multi_reduction <add>, %68, %cst_29 [1] : vector<3x2xf32> to vector<3xf32>
    %70 = vector.shape_cast %69 : vector<3xf32> to vector<3x1xf32>
    %cst_30 = arith.constant 2.000000e+00 : f32
    %71 = vector.broadcast %cst_30 : f32 to vector<3x1xf32>
    %72 = arith.divf %70, %71 : vector<3x1xf32>
    %c0_31 = arith.constant 0 : index
    %c0_32 = arith.constant 0 : index
    %c0_33 = arith.constant 0 : index
    %73 = vector.load %arg3[%c0_31, %c0_32, %c0_33] : memref<3x16x10xf32, #tpu.memory_space<vmem>>, vector<3x16x10xf32>
    %c0_34 = arith.constant 0 : index
    %c0_35 = arith.constant 0 : index
    %c0_36 = arith.constant 0 : index
    %74 = vector.load %arg4[%c0_34, %c0_35, %c0_36] : memref<3x16x10xf32, #tpu.memory_space<vmem>>, vector<3x16x10xf32>
    %75 = math.absf %73 : vector<3x16x10xf32>
    %cst_37 = arith.constant 0.000000e+00 : f32
    %76 = vector.broadcast %cst_37 : f32 to vector<3x16x10xf32>
    %77 = arith.subf %76, %75 : vector<3x16x10xf32>
    %78 = math.exp %77 : vector<3x16x10xf32>
    %cst_38 = arith.constant 1.000000e+00 : f32
    %79 = vector.broadcast %cst_38 : f32 to vector<3x16x10xf32>
    %80 = arith.addf %79, %78 : vector<3x16x10xf32>
    %81 = math.log %80 : vector<3x16x10xf32>
    %cst_39 = arith.constant 0.000000e+00 : f32
    %82 = vector.broadcast %cst_39 : f32 to vector<3x16x10xf32>
    %83 = arith.maximumf %73, %82 : vector<3x16x10xf32>
    %84 = arith.addf %83, %81 : vector<3x16x10xf32>
    %cst_40 = arith.constant 0.000000e+00 : f32
    %85 = vector.broadcast %cst_40 : f32 to vector<3x16x10xf32>
    %86 = arith.subf %85, %73 : vector<3x16x10xf32>
    %cst_41 = arith.constant 0.000000e+00 : f32
    %87 = vector.broadcast %cst_41 : f32 to vector<3x16x10xf32>
    %88 = arith.maximumf %86, %87 : vector<3x16x10xf32>
    %89 = arith.addf %88, %81 : vector<3x16x10xf32>
    %cst_42 = arith.constant 1.000000e+00 : f32
    %90 = vector.broadcast %cst_42 : f32 to vector<3x16x10xf32>
    %91 = arith.addf %90, %78 : vector<3x16x10xf32>
    %92 = tpu.reciprocal %91 {approx = true} : vector<3x16x10xf32> -> vector<3x16x10xf32>
    %cst_43 = arith.constant 0.000000e+00 : f32
    %93 = vector.broadcast %cst_43 : f32 to vector<3x16x10xf32>
    %94 = arith.cmpf oge, %73, %93 : vector<3x16x10xf32>
    %cst_44 = arith.constant 1.000000e+00 : f32
    %95 = vector.broadcast %cst_44 : f32 to vector<3x16x10xf32>
    %96 = arith.select %94, %95, %78 : vector<3x16x10xi1>, vector<3x16x10xf32>
    %97 = arith.mulf %96, %92 : vector<3x16x10xf32>
    %cst_45 = arith.constant 0.000000e+00 : f32
    %98 = vector.broadcast %cst_45 : f32 to vector<3x16x10xf32>
    %99 = arith.cmpf oge, %73, %98 : vector<3x16x10xf32>
    %cst_46 = arith.constant 1.000000e+00 : f32
    %100 = vector.broadcast %cst_46 : f32 to vector<3x16x10xf32>
    %101 = arith.select %99, %78, %100 : vector<3x16x10xi1>, vector<3x16x10xf32>
    %102 = arith.mulf %101, %92 : vector<3x16x10xf32>
    %cst_47 = arith.constant 1.000000e+00 : f32
    %103 = vector.broadcast %cst_47 : f32 to vector<3x16x10xf32>
    %104 = arith.cmpf oeq, %74, %103 : vector<3x16x10xf32>
    %105 = arith.extui %104 : vector<3x16x10xi1> to vector<3x16x10xi32>
    %106 = arith.sitofp %105 : vector<3x16x10xi32> to vector<3x16x10xf32>
    %cst_48 = arith.constant 1.000000e+00 : f32
    %107 = vector.broadcast %cst_48 : f32 to vector<3x16x10xf32>
    %108 = arith.cmpf olt, %74, %107 : vector<3x16x10xf32>
    %109 = arith.extui %108 : vector<3x16x10xi1> to vector<3x16x10xi32>
    %110 = arith.sitofp %109 : vector<3x16x10xi32> to vector<3x16x10xf32>
    %cst_49 = arith.constant 0.000000e+00 : f32
    %111 = vector.broadcast %cst_49 : f32 to vector<3x16x10xf32>
    %112 = arith.subf %111, %89 : vector<3x16x10xf32>
    %113 = arith.mulf %102, %102 : vector<3x16x10xf32>
    %114 = arith.mulf %112, %113 : vector<3x16x10xf32>
    %115 = arith.mulf %114, %106 : vector<3x16x10xf32>
    %cst_50 = arith.constant 0.000000e+00 : f32
    %116 = vector.broadcast %cst_50 : f32 to vector<3x16x10xf32>
    %117 = arith.subf %116, %84 : vector<3x16x10xf32>
    %118 = arith.mulf %97, %97 : vector<3x16x10xf32>
    %119 = arith.mulf %117, %118 : vector<3x16x10xf32>
    %120 = arith.mulf %119, %110 : vector<3x16x10xf32>
    %cst_51 = arith.constant dense<0.000000e+00> : vector<3x16xf32>
    %121 = vector.multi_reduction <add>, %106, %cst_51 [2] : vector<3x16x10xf32> to vector<3x16xf32>
    %cst_52 = arith.constant dense<0.000000e+00> : vector<3xf32>
    %122 = vector.multi_reduction <add>, %121, %cst_52 [1] : vector<3x16xf32> to vector<3xf32>
    %123 = vector.shape_cast %122 : vector<3xf32> to vector<3x1xf32>
    %cst_53 = arith.constant dense<0.000000e+00> : vector<3x16xf32>
    %124 = vector.multi_reduction <add>, %115, %cst_53 [2] : vector<3x16x10xf32> to vector<3x16xf32>
    %cst_54 = arith.constant dense<0.000000e+00> : vector<3xf32>
    %125 = vector.multi_reduction <add>, %124, %cst_54 [1] : vector<3x16xf32> to vector<3xf32>
    %126 = vector.shape_cast %125 : vector<3xf32> to vector<3x1xf32>
    %cst_55 = arith.constant dense<0.000000e+00> : vector<3x16xf32>
    %127 = vector.multi_reduction <add>, %120, %cst_55 [2] : vector<3x16x10xf32> to vector<3x16xf32>
    %cst_56 = arith.constant dense<0.000000e+00> : vector<3xf32>
    %128 = vector.multi_reduction <add>, %127, %cst_56 [1] : vector<3x16xf32> to vector<3xf32>
    %129 = vector.shape_cast %128 : vector<3xf32> to vector<3x1xf32>
    %cst_57 = arith.constant 0.000000e+00 : f32
    %130 = vector.broadcast %cst_57 : f32 to vector<3x1xf32>
    %131 = arith.cmpf oeq, %123, %130 : vector<3x1xf32>
    %cst_58 = arith.constant 0.000000e+00 : f32
    %132 = vector.broadcast %cst_58 : f32 to vector<3x1xf32>
    %133 = arith.subf %132, %129 : vector<3x1xf32>
    %134 = arith.addf %126, %129 : vector<3x1xf32>
    %cst_59 = arith.constant 0.000000e+00 : f32
    %135 = vector.broadcast %cst_59 : f32 to vector<3x1xf32>
    %136 = arith.subf %135, %134 : vector<3x1xf32>
    %cst_60 = arith.constant 1.000000e+00 : f32
    %137 = vector.broadcast %cst_60 : f32 to vector<3x1xf32>
    %138 = arith.maximumf %123, %137 : vector<3x1xf32>
    %139 = arith.divf %136, %138 : vector<3x1xf32>
    %140 = arith.select %131, %133, %139 : vector<3x1xi1>, vector<3x1xf32>
    %c0_61 = arith.constant 0 : index
    %c0_62 = arith.constant 0 : index
    %c0_63 = arith.constant 0 : index
    %141 = vector.load %arg5[%c0_61, %c0_62, %c0_63] : memref<3x17x16xf32, #tpu.memory_space<vmem>>, vector<3x17x16xf32>
    %142 = vector.extract_strided_slice %141 {offsets = [0, 0, 0], sizes = [3, 4, 16], strides = [1, 1, 1]} : vector<3x17x16xf32> to vector<3x4x16xf32>
    %143 = vector.extract_strided_slice %141 {offsets = [0, 4, 0], sizes = [3, 4, 16], strides = [1, 1, 1]} : vector<3x17x16xf32> to vector<3x4x16xf32>
    %144 = vector.extract_strided_slice %141 {offsets = [0, 8, 0], sizes = [3, 4, 16], strides = [1, 1, 1]} : vector<3x17x16xf32> to vector<3x4x16xf32>
    %145 = vector.extract_strided_slice %141 {offsets = [0, 12, 0], sizes = [3, 4, 16], strides = [1, 1, 1]} : vector<3x17x16xf32> to vector<3x4x16xf32>
    %146 = vector.extract_strided_slice %141 {offsets = [0, 16, 0], sizes = [3, 1, 16], strides = [1, 1, 1]} : vector<3x17x16xf32> to vector<3x1x16xf32>
    %147 = arith.subf %142, %144 : vector<3x4x16xf32>
    %148 = math.absf %147 : vector<3x4x16xf32>
    %149 = vector.broadcast %146 : vector<3x1x16xf32> to vector<3x4x16xf32>
    %150 = arith.mulf %148, %149 : vector<3x4x16xf32>
    %cst_64 = arith.constant dense<0.000000e+00> : vector<3x16xf32>
    %151 = vector.multi_reduction <add>, %150, %cst_64 [1] : vector<3x4x16xf32> to vector<3x16xf32>
    %152 = vector.shape_cast %151 : vector<3x16xf32> to vector<3x1x16xf32>
    %cst_65 = arith.constant dense<0.000000e+00> : vector<3x1xf32>
    %153 = vector.multi_reduction <add>, %152, %cst_65 [2] : vector<3x1x16xf32> to vector<3x1xf32>
    %154 = vector.broadcast %3 : vector<1x1xf32> to vector<3x1xf32>
    %155 = arith.divf %153, %154 : vector<3x1xf32>
    %cst_66 = arith.constant 0.000000e+00 : f32
    %156 = vector.broadcast %cst_66 : f32 to vector<3x4x16xf32>
    %157 = arith.cmpf one, %145, %156 : vector<3x4x16xf32>
    %158 = arith.extui %157 : vector<3x4x16xi1> to vector<3x4x16xi32>
    %159 = arith.sitofp %158 : vector<3x4x16xi32> to vector<3x4x16xf32>
    %cst_67 = arith.constant dense<0xFF800000> : vector<3x16xf32>
    %160 = vector.multi_reduction <maximumf>, %159, %cst_67 [1] : vector<3x4x16xf32> to vector<3x16xf32>
    %161 = vector.shape_cast %160 : vector<3x16xf32> to vector<3x1x16xf32>
    %162 = arith.mulf %161, %146 : vector<3x1x16xf32>
    %cst_68 = arith.constant dense<0.000000e+00> : vector<3x1xf32>
    %163 = vector.multi_reduction <add>, %162, %cst_68 [2] : vector<3x1x16xf32> to vector<3x1xf32>
    %164 = arith.subf %143, %145 : vector<3x4x16xf32>
    %165 = math.absf %164 : vector<3x4x16xf32>
    %166 = vector.broadcast %162 : vector<3x1x16xf32> to vector<3x4x16xf32>
    %167 = arith.mulf %165, %166 : vector<3x4x16xf32>
    %cst_69 = arith.constant dense<0.000000e+00> : vector<3x16xf32>
    %168 = vector.multi_reduction <add>, %167, %cst_69 [1] : vector<3x4x16xf32> to vector<3x16xf32>
    %169 = vector.shape_cast %168 : vector<3x16xf32> to vector<3x1x16xf32>
    %cst_70 = arith.constant dense<0.000000e+00> : vector<3x1xf32>
    %170 = vector.multi_reduction <add>, %169, %cst_70 [2] : vector<3x1x16xf32> to vector<3x1xf32>
    %cst_71 = arith.constant 9.99999974E-5 : f32
    %171 = vector.broadcast %cst_71 : f32 to vector<3x1xf32>
    %172 = arith.addf %163, %171 : vector<3x1xf32>
    %173 = arith.divf %170, %172 : vector<3x1xf32>
    %174 = vector.extract_strided_slice %142 {offsets = [0, 0, 0], sizes = [3, 1, 16], strides = [1, 1, 1]} : vector<3x4x16xf32> to vector<3x1x16xf32>
    %175 = vector.extract_strided_slice %142 {offsets = [0, 1, 0], sizes = [3, 1, 16], strides = [1, 1, 1]} : vector<3x4x16xf32> to vector<3x1x16xf32>
    %176 = vector.extract_strided_slice %142 {offsets = [0, 2, 0], sizes = [3, 1, 16], strides = [1, 1, 1]} : vector<3x4x16xf32> to vector<3x1x16xf32>
    %177 = vector.extract_strided_slice %142 {offsets = [0, 3, 0], sizes = [3, 1, 16], strides = [1, 1, 1]} : vector<3x4x16xf32> to vector<3x1x16xf32>
    %cst_72 = arith.constant 5.000000e-01 : f32
    %178 = vector.broadcast %cst_72 : f32 to vector<3x1x16xf32>
    %179 = arith.mulf %178, %176 : vector<3x1x16xf32>
    %180 = arith.subf %174, %179 : vector<3x1x16xf32>
    %cst_73 = arith.constant 5.000000e-01 : f32
    %181 = vector.broadcast %cst_73 : f32 to vector<3x1x16xf32>
    %182 = arith.mulf %181, %177 : vector<3x1x16xf32>
    %183 = arith.subf %175, %182 : vector<3x1x16xf32>
    %cst_74 = arith.constant 5.000000e-01 : f32
    %184 = vector.broadcast %cst_74 : f32 to vector<3x1x16xf32>
    %185 = arith.mulf %184, %176 : vector<3x1x16xf32>
    %186 = arith.addf %174, %185 : vector<3x1x16xf32>
    %cst_75 = arith.constant 5.000000e-01 : f32
    %187 = vector.broadcast %cst_75 : f32 to vector<3x1x16xf32>
    %188 = arith.mulf %187, %177 : vector<3x1x16xf32>
    %189 = arith.addf %175, %188 : vector<3x1x16xf32>
    %190 = vector.extract_strided_slice %144 {offsets = [0, 0, 0], sizes = [3, 1, 16], strides = [1, 1, 1]} : vector<3x4x16xf32> to vector<3x1x16xf32>
    %191 = vector.extract_strided_slice %144 {offsets = [0, 1, 0], sizes = [3, 1, 16], strides = [1, 1, 1]} : vector<3x4x16xf32> to vector<3x1x16xf32>
    %192 = vector.extract_strided_slice %144 {offsets = [0, 2, 0], sizes = [3, 1, 16], strides = [1, 1, 1]} : vector<3x4x16xf32> to vector<3x1x16xf32>
    %193 = vector.extract_strided_slice %144 {offsets = [0, 3, 0], sizes = [3, 1, 16], strides = [1, 1, 1]} : vector<3x4x16xf32> to vector<3x1x16xf32>
    %cst_76 = arith.constant 5.000000e-01 : f32
    %194 = vector.broadcast %cst_76 : f32 to vector<3x1x16xf32>
    %195 = arith.mulf %194, %192 : vector<3x1x16xf32>
    %196 = arith.subf %190, %195 : vector<3x1x16xf32>
    %cst_77 = arith.constant 5.000000e-01 : f32
    %197 = vector.broadcast %cst_77 : f32 to vector<3x1x16xf32>
    %198 = arith.mulf %197, %193 : vector<3x1x16xf32>
    %199 = arith.subf %191, %198 : vector<3x1x16xf32>
    %cst_78 = arith.constant 5.000000e-01 : f32
    %200 = vector.broadcast %cst_78 : f32 to vector<3x1x16xf32>
    %201 = arith.mulf %200, %192 : vector<3x1x16xf32>
    %202 = arith.addf %190, %201 : vector<3x1x16xf32>
    %cst_79 = arith.constant 5.000000e-01 : f32
    %203 = vector.broadcast %cst_79 : f32 to vector<3x1x16xf32>
    %204 = arith.mulf %203, %193 : vector<3x1x16xf32>
    %205 = arith.addf %191, %204 : vector<3x1x16xf32>
    %206 = arith.subf %186, %180 : vector<3x1x16xf32>
    %207 = arith.subf %189, %183 : vector<3x1x16xf32>
    %208 = arith.mulf %206, %207 : vector<3x1x16xf32>
    %209 = arith.subf %202, %196 : vector<3x1x16xf32>
    %210 = arith.subf %205, %199 : vector<3x1x16xf32>
    %211 = arith.mulf %209, %210 : vector<3x1x16xf32>
    %212 = arith.minimumf %186, %202 : vector<3x1x16xf32>
    %213 = arith.maximumf %180, %196 : vector<3x1x16xf32>
    %214 = arith.subf %212, %213 : vector<3x1x16xf32>
    %cst_80 = arith.constant 0.000000e+00 : f32
    %215 = vector.broadcast %cst_80 : f32 to vector<3x1x16xf32>
    %216 = arith.maximumf %214, %215 : vector<3x1x16xf32>
    %217 = arith.minimumf %189, %205 : vector<3x1x16xf32>
    %218 = arith.maximumf %183, %199 : vector<3x1x16xf32>
    %219 = arith.subf %217, %218 : vector<3x1x16xf32>
    %cst_81 = arith.constant 0.000000e+00 : f32
    %220 = vector.broadcast %cst_81 : f32 to vector<3x1x16xf32>
    %221 = arith.maximumf %219, %220 : vector<3x1x16xf32>
    %222 = arith.mulf %216, %221 : vector<3x1x16xf32>
    %223 = arith.addf %208, %211 : vector<3x1x16xf32>
    %224 = arith.subf %223, %222 : vector<3x1x16xf32>
    %cst_82 = arith.constant 1.000000e-07 : f32
    %225 = vector.broadcast %cst_82 : f32 to vector<3x1x16xf32>
    %226 = arith.addf %224, %225 : vector<3x1x16xf32>
    %227 = tpu.reciprocal %226 {approx = true} : vector<3x1x16xf32> -> vector<3x1x16xf32>
    %228 = arith.mulf %222, %227 : vector<3x1x16xf32>
    %229 = arith.maximumf %186, %202 : vector<3x1x16xf32>
    %230 = arith.minimumf %180, %196 : vector<3x1x16xf32>
    %231 = arith.subf %229, %230 : vector<3x1x16xf32>
    %cst_83 = arith.constant 0.000000e+00 : f32
    %232 = vector.broadcast %cst_83 : f32 to vector<3x1x16xf32>
    %233 = arith.maximumf %231, %232 : vector<3x1x16xf32>
    %234 = arith.maximumf %189, %205 : vector<3x1x16xf32>
    %235 = arith.minimumf %183, %199 : vector<3x1x16xf32>
    %236 = arith.subf %234, %235 : vector<3x1x16xf32>
    %cst_84 = arith.constant 0.000000e+00 : f32
    %237 = vector.broadcast %cst_84 : f32 to vector<3x1x16xf32>
    %238 = arith.maximumf %236, %237 : vector<3x1x16xf32>
    %239 = arith.mulf %233, %238 : vector<3x1x16xf32>
    %240 = arith.subf %239, %224 : vector<3x1x16xf32>
    %cst_85 = arith.constant 1.000000e-07 : f32
    %241 = vector.broadcast %cst_85 : f32 to vector<3x1x16xf32>
    %242 = arith.addf %239, %241 : vector<3x1x16xf32>
    %243 = tpu.reciprocal %242 {approx = true} : vector<3x1x16xf32> -> vector<3x1x16xf32>
    %244 = arith.mulf %240, %243 : vector<3x1x16xf32>
    %245 = arith.subf %228, %244 : vector<3x1x16xf32>
    %cst_86 = arith.constant 1.000000e+00 : f32
    %246 = vector.broadcast %cst_86 : f32 to vector<3x1x16xf32>
    %247 = arith.subf %246, %245 : vector<3x1x16xf32>
    %248 = arith.mulf %247, %146 : vector<3x1x16xf32>
    %cst_87 = arith.constant dense<0.000000e+00> : vector<3x1xf32>
    %249 = vector.multi_reduction <add>, %248, %cst_87 [2] : vector<3x1x16xf32> to vector<3x1xf32>
    %250 = vector.broadcast %3 : vector<1x1xf32> to vector<3x1xf32>
    %251 = arith.divf %249, %250 : vector<3x1xf32>
    %252 = vector.extract_strided_slice %143 {offsets = [0, 0, 0], sizes = [3, 1, 16], strides = [1, 1, 1]} : vector<3x4x16xf32> to vector<3x1x16xf32>
    %253 = vector.extract_strided_slice %143 {offsets = [0, 1, 0], sizes = [3, 1, 16], strides = [1, 1, 1]} : vector<3x4x16xf32> to vector<3x1x16xf32>
    %254 = vector.extract_strided_slice %143 {offsets = [0, 2, 0], sizes = [3, 1, 16], strides = [1, 1, 1]} : vector<3x4x16xf32> to vector<3x1x16xf32>
    %255 = vector.extract_strided_slice %143 {offsets = [0, 3, 0], sizes = [3, 1, 16], strides = [1, 1, 1]} : vector<3x4x16xf32> to vector<3x1x16xf32>
    %cst_88 = arith.constant 5.000000e-01 : f32
    %256 = vector.broadcast %cst_88 : f32 to vector<3x1x16xf32>
    %257 = arith.mulf %256, %254 : vector<3x1x16xf32>
    %258 = arith.subf %252, %257 : vector<3x1x16xf32>
    %cst_89 = arith.constant 5.000000e-01 : f32
    %259 = vector.broadcast %cst_89 : f32 to vector<3x1x16xf32>
    %260 = arith.mulf %259, %255 : vector<3x1x16xf32>
    %261 = arith.subf %253, %260 : vector<3x1x16xf32>
    %cst_90 = arith.constant 5.000000e-01 : f32
    %262 = vector.broadcast %cst_90 : f32 to vector<3x1x16xf32>
    %263 = arith.mulf %262, %254 : vector<3x1x16xf32>
    %264 = arith.addf %252, %263 : vector<3x1x16xf32>
    %cst_91 = arith.constant 5.000000e-01 : f32
    %265 = vector.broadcast %cst_91 : f32 to vector<3x1x16xf32>
    %266 = arith.mulf %265, %255 : vector<3x1x16xf32>
    %267 = arith.addf %253, %266 : vector<3x1x16xf32>
    %268 = vector.extract_strided_slice %145 {offsets = [0, 0, 0], sizes = [3, 1, 16], strides = [1, 1, 1]} : vector<3x4x16xf32> to vector<3x1x16xf32>
    %269 = vector.extract_strided_slice %145 {offsets = [0, 1, 0], sizes = [3, 1, 16], strides = [1, 1, 1]} : vector<3x4x16xf32> to vector<3x1x16xf32>
    %270 = vector.extract_strided_slice %145 {offsets = [0, 2, 0], sizes = [3, 1, 16], strides = [1, 1, 1]} : vector<3x4x16xf32> to vector<3x1x16xf32>
    %271 = vector.extract_strided_slice %145 {offsets = [0, 3, 0], sizes = [3, 1, 16], strides = [1, 1, 1]} : vector<3x4x16xf32> to vector<3x1x16xf32>
    %cst_92 = arith.constant 5.000000e-01 : f32
    %272 = vector.broadcast %cst_92 : f32 to vector<3x1x16xf32>
    %273 = arith.mulf %272, %270 : vector<3x1x16xf32>
    %274 = arith.subf %268, %273 : vector<3x1x16xf32>
    %cst_93 = arith.constant 5.000000e-01 : f32
    %275 = vector.broadcast %cst_93 : f32 to vector<3x1x16xf32>
    %276 = arith.mulf %275, %271 : vector<3x1x16xf32>
    %277 = arith.subf %269, %276 : vector<3x1x16xf32>
    %cst_94 = arith.constant 5.000000e-01 : f32
    %278 = vector.broadcast %cst_94 : f32 to vector<3x1x16xf32>
    %279 = arith.mulf %278, %270 : vector<3x1x16xf32>
    %280 = arith.addf %268, %279 : vector<3x1x16xf32>
    %cst_95 = arith.constant 5.000000e-01 : f32
    %281 = vector.broadcast %cst_95 : f32 to vector<3x1x16xf32>
    %282 = arith.mulf %281, %271 : vector<3x1x16xf32>
    %283 = arith.addf %269, %282 : vector<3x1x16xf32>
    %284 = arith.subf %264, %258 : vector<3x1x16xf32>
    %285 = arith.subf %267, %261 : vector<3x1x16xf32>
    %286 = arith.mulf %284, %285 : vector<3x1x16xf32>
    %287 = arith.subf %280, %274 : vector<3x1x16xf32>
    %288 = arith.subf %283, %277 : vector<3x1x16xf32>
    %289 = arith.mulf %287, %288 : vector<3x1x16xf32>
    %290 = arith.minimumf %264, %280 : vector<3x1x16xf32>
    %291 = arith.maximumf %258, %274 : vector<3x1x16xf32>
    %292 = arith.subf %290, %291 : vector<3x1x16xf32>
    %cst_96 = arith.constant 0.000000e+00 : f32
    %293 = vector.broadcast %cst_96 : f32 to vector<3x1x16xf32>
    %294 = arith.maximumf %292, %293 : vector<3x1x16xf32>
    %295 = arith.minimumf %267, %283 : vector<3x1x16xf32>
    %296 = arith.maximumf %261, %277 : vector<3x1x16xf32>
    %297 = arith.subf %295, %296 : vector<3x1x16xf32>
    %cst_97 = arith.constant 0.000000e+00 : f32
    %298 = vector.broadcast %cst_97 : f32 to vector<3x1x16xf32>
    %299 = arith.maximumf %297, %298 : vector<3x1x16xf32>
    %300 = arith.mulf %294, %299 : vector<3x1x16xf32>
    %301 = arith.addf %286, %289 : vector<3x1x16xf32>
    %302 = arith.subf %301, %300 : vector<3x1x16xf32>
    %cst_98 = arith.constant 1.000000e-07 : f32
    %303 = vector.broadcast %cst_98 : f32 to vector<3x1x16xf32>
    %304 = arith.addf %302, %303 : vector<3x1x16xf32>
    %305 = tpu.reciprocal %304 {approx = true} : vector<3x1x16xf32> -> vector<3x1x16xf32>
    %306 = arith.mulf %300, %305 : vector<3x1x16xf32>
    %307 = arith.maximumf %264, %280 : vector<3x1x16xf32>
    %308 = arith.minimumf %258, %274 : vector<3x1x16xf32>
    %309 = arith.subf %307, %308 : vector<3x1x16xf32>
    %cst_99 = arith.constant 0.000000e+00 : f32
    %310 = vector.broadcast %cst_99 : f32 to vector<3x1x16xf32>
    %311 = arith.maximumf %309, %310 : vector<3x1x16xf32>
    %312 = arith.maximumf %267, %283 : vector<3x1x16xf32>
    %313 = arith.minimumf %261, %277 : vector<3x1x16xf32>
    %314 = arith.subf %312, %313 : vector<3x1x16xf32>
    %cst_100 = arith.constant 0.000000e+00 : f32
    %315 = vector.broadcast %cst_100 : f32 to vector<3x1x16xf32>
    %316 = arith.maximumf %314, %315 : vector<3x1x16xf32>
    %317 = arith.mulf %311, %316 : vector<3x1x16xf32>
    %318 = arith.subf %317, %302 : vector<3x1x16xf32>
    %cst_101 = arith.constant 1.000000e-07 : f32
    %319 = vector.broadcast %cst_101 : f32 to vector<3x1x16xf32>
    %320 = arith.addf %317, %319 : vector<3x1x16xf32>
    %321 = tpu.reciprocal %320 {approx = true} : vector<3x1x16xf32> -> vector<3x1x16xf32>
    %322 = arith.mulf %318, %321 : vector<3x1x16xf32>
    %323 = arith.subf %306, %322 : vector<3x1x16xf32>
    %cst_102 = arith.constant 1.000000e+00 : f32
    %324 = vector.broadcast %cst_102 : f32 to vector<3x1x16xf32>
    %325 = arith.subf %324, %323 : vector<3x1x16xf32>
    %326 = arith.mulf %325, %162 : vector<3x1x16xf32>
    %cst_103 = arith.constant dense<0.000000e+00> : vector<3x1xf32>
    %327 = vector.multi_reduction <add>, %326, %cst_103 [2] : vector<3x1x16xf32> to vector<3x1xf32>
    %cst_104 = arith.constant 9.99999974E-5 : f32
    %328 = vector.broadcast %cst_104 : f32 to vector<3x1xf32>
    %329 = arith.addf %163, %328 : vector<3x1xf32>
    %330 = arith.divf %327, %329 : vector<3x1xf32>
    %331 = tpu.concatenate %34, %60, %72, %140, %155, %173, %251, %330 in 1 : vector<3x1xf32>, vector<3x1xf32>, vector<3x1xf32>, vector<3x1xf32>, vector<3x1xf32>, vector<3x1xf32>, vector<3x1xf32>, vector<3x1xf32> -> vector<3x8xf32>
    %c0_105 = arith.constant 0 : index
    %c0_106 = arith.constant 0 : index
    %332 = vector.load %arg7[%c0_105, %c0_106] : memref<3x8xf32, #tpu.memory_space<vmem>>, vector<3x8xf32>
    tpu.vector_store %arg7[%c0_105, %c0_106], %331 {strides = array<i32>} : memref<3x8xf32, #tpu.memory_space<vmem>>, vector<3x8xf32>,
    return
  }
}

</mosaic_0001>

<bundles_post_ra>
// kernel: run.1
= control target key start
LH: loop header
LB: loop body
LE: loop exit
PB: predicated region body
PF: predicated region fallthrough
CT: control target
= control target key end

     0   :  { %s2806_s0 = inlined_call_operand.vmem [shape: f32[3,2,8,12], index: 0, kind: input, shape index: {}]   ;;  %s2807_s1 = inlined_call_operand.vmem [shape: s32[3,2,8], index: 1, kind: input, shape index: {}]   ;;  %s2808_s2 = inlined_call_operand.vmem [shape: f32[1,2], index: 2, kind: input, shape index: {}]   ;;  %s2809_s3 = inlined_call_operand.vmem [shape: f32[3,16,10], index: 3, kind: input, shape index: {}]   ;;  %s2810_s4 = inlined_call_operand.vmem [shape: f32[3,16,10], index: 4, kind: input, shape index: {}]   ;;  %s2811_s5 = inlined_call_operand.vmem [shape: f32[3,17,16], index: 5, kind: input, shape index: {}]   ;;  %s2812_s6 = inlined_call_operand.<no memory space> [shape: f32[1,1], index: 6, kind: input, shape index: {}]   ;;  %s2813_s7 = inlined_call_operand.hbm [shape: f32[3,8], index: 7, kind: output, shape index: {}]  }
   0x1   :  { %v12_v0 = vstv %s2812_s6 }
   0x2   :  { %13 = vst [vmem:[#allocation2] sm:$0x1] %v12_v0 }
   0x3   :  { %v1854_v1 = vld [vmem:[%s2806_s0 + $0x10] sm:$0xff]  ;;  %vm102_vm0 = vcmask 97280   ;;  %v1859_v2 = vld [vmem:[%s2806_s0] sm:$0xff]  ;;  %v1864_v3 = vld [vmem:[%s2806_s0 + $0x18] sm:$0xff] }
   0x4   :  { %v109_v4 = vsel %vm102_vm0, %v1854_v1, -inf  ;;  %v103_v5 = vsel %vm102_vm0, %v1859_v2, -inf  ;;  %v1873_v6 = vld [vmem:[%s2806_s0 + $0x8] sm:$0xff]  ;;  %v112_v7 = vsel %vm102_vm0, %v1864_v3, -inf  ;;  %v1887_v10 = vld [vmem:[%s2806_s0 + $0x20] sm:$0xff] }
   0x5   :  { %110 = vmax.xlane.f32.xlu1 %v109_v4  ;;  %104 = vmax.xlane.f32.xlu0 %v103_v5  ;;  %v106_v8 = vsel %vm102_vm0, %v1873_v6, -inf  ;;  %v1882_v9 = vld [vmem:[%s2806_s0 + $0x28] sm:$0xff] }
   0x6   :  { %14 = vsyncpa [#allocation4], 0  ;;  %v118_v11 = vsel %vm102_vm0, %v1882_v9, -inf  ;;  %v115_v12 = vsel %vm102_vm0, %v1887_v10, -inf  ;;  %v40_v13 = vlaneseq  ;;  %v35_v16 = vld [vmem:[%s2807_s1] sm:$0x3] }
   0x7   :  { %v36_v19 = vld [vmem:[%s2807_s1 + $0x2] sm:$0x3]  ;;  %v37_v22 = vld [vmem:[%s2807_s1 + $0x4] sm:$0x3]  ;;  %vm205_vm1 = vcmp.eq.s32.totalorder %v35_v16, 11  ;;  %v1801_v26 = vmov 1.0  }
   0x8   :  { %v1893_v14 = vshrl.u32 %v40_v13, 7  ;;  %v1911_v27 = vsel %vm205_vm1, 0.1, %v1801_v26  ;;  %vm207_vm2 = vcmp.eq.s32.totalorder %v37_v22, 11  ;;  %vm206_vm3 = vcmp.eq.s32.totalorder %v36_v19, 11  ;;  %s1805_s9 = smov 4  }
   0x9   :  { %113 = vmax.xlane.f32.xlu1 %v112_v7  ;;  %107 = vmax.xlane.f32.xlu0 %v106_v8  ;;  %v1916_v30 = vsel %vm207_vm2, 0.1, %v1801_v26  ;;  %v1918_v31 = vsel %vm206_vm3, 0.1, %v1801_v26  ;;  %vm490_vm4 = vcmp.ne.s32.totalorder %v35_v16, 11  ;;  %v2816_v34 = vmov 0.0  }
   0xa   :  { %v51_v15 = vsub.s32 1, %v1893_v14  ;;  %v1900_v18 = vsub.s32 0, %v1893_v14  ;;  %v1925_v35 = vsel %vm490_vm4, 1.0, %v2816_v34  ;;  %vm492_vm5 = vcmp.ne.s32.totalorder %v37_v22, 11  ;;  %s1806_s10 = smov 7   ;;  %s1807_s11 = smov [#allocation3]  }
   0xb   :  { %v1931_v38 = vsel %vm492_vm5, 1.0, %v2816_v34  ;;  %vm491_vm6 = vcmp.ne.s32.totalorder %v36_v19, 11  ;;  %v1956_v52 = vand.u32 127, %v40_v13  ;;  %vm323_vm4 = vcmask 58368   ;;  %s1632_s12 = sshll.u32 %s1807_s11, 4  ;;  %s1633_s12 = int_to_ptr.vmem [resolvable:$true] %s1632_s12 }
   0xc   :  { %v52_v17 = vrot.slane %v35_v16, %v51_v15  ;;  %2826 = vst [vmem:[#allocation6_spill] sm:$0xff] %v1900_v18  ;;  %v59_v20 = vrot.slane %v36_v19, %v1900_v18  ;;  %v45_v21 = vrot.slane %v35_v16, %v1900_v18  ;;  %v66_v23 = vrot.slane %v36_v19, %v51_v15  ;;  %s1779_s13 = scalar_lea.vmem %s1633_s12, 64  ;;  %p1784_p1 = scmp.lt.s32.totalorder %s1633_s12, %s1633_s12 }
   0xd   :  { %119 = vmax.xlane.f32.xlu1 %v118_v11  ;;  %116 = vmax.xlane.f32.xlu0 %v115_v12  ;;  %v73_v24 = vrot.slane %v37_v22, %v1900_v18  ;;  %v80_v25 = vrot.slane %v37_v22, %v51_v15  ;;  %v217_v28 = vrot.slane %v1911_v27, %v1900_v18  ;;  %v1938_v42 = vsel %vm491_vm6, 1.0, %v2816_v34  ;;  %p1780_p0 = scmp.ne.s32.totalorder %s1633_s12, %s1779_s13  ;;  %p1785_p2 = scmp.lt.s32.totalorder %s1779_s13, %s1779_s13 }
   0xe   :  { %v224_v29 = vrot.slane %v1911_v27, %v51_v15  ;;  %v245_v32 = vrot.slane %v1916_v30, %v1900_v18  ;;  %v231_v33 = vrot.slane %v1918_v31, %v1900_v18  ;;  %v523_v36 = vrot.slane %v1925_v35, %v1900_v18 }
   0xf   :  { %v238_v37 = vrot.slane %v1918_v31, %v51_v15  ;;  %v551_v39 = vrot.slane %v1931_v38, %v1900_v18  ;;  %v252_v40 = vrot.slane %v1916_v30, %v51_v15  ;;  %v530_v41 = vrot.slane %v1925_v35, %v51_v15  ;;  %p1786_p3 = por %p1785_p2, %p1784_p1 }
  0x10   :  { %v537_v43 = vrot.slane %v1938_v42, %v1900_v18  ;;  %v544_v44 = vrot.slane %v1938_v42, %v51_v15  ;;  %v558_v45 = vrot.slane %v1931_v38, %v51_v15  ;;  %vm1007_vm5 = vcmask 80896  }
  0x11   :  { %p1787_p4 = pnand %p1786_p3, %p1780_p0 }
  0x1e   :  { %54 = vbcast.lane.b32.xlu1 %v52_v17, 256 }
  0x22   :  { %61 = vbcast.lane.b32.xlu1 %v59_v20, 256 }
  0x23   :  { %47 = vbcast.lane.b32.xlu0 %v45_v21, 256 }
  0x26   :  { %68 = vbcast.lane.b32.xlu1 %v66_v23, 256 }
  0x27   :  { %75 = vbcast.lane.b32.xlu0 %v73_v24, 256 }
  0x2a   :  { %82 = vbcast.lane.b32.xlu1 %v80_v25, 256  ;;  %v2028_v25 = vld [vmem:[%s2809_s3] sm:$0xff] }
  0x2b   :  { %219 = vbcast.lane.b32.xlu0 %v217_v28, 256  ;;  %v857_v18 = vmax.f32 %v2028_v25, 0.0 }
  0x2e   :  { %226 = vbcast.lane.b32.xlu1 %v224_v29, 256 }
  0x2f   :  { %247 = vbcast.lane.b32.xlu0 %v245_v32, 256 }
  0x32   :  { %233 = vbcast.lane.b32.xlu1 %v231_v33, 256 }
  0x33   :  { %525 = vbcast.lane.b32.xlu0 %v523_v36, 256 }
  0x36   :  { %240 = vbcast.lane.b32.xlu1 %v238_v37, 256 }
  0x37   :  { %553 = vbcast.lane.b32.xlu0 %v551_v39, 256 }
  0x3a   :  { %254 = vbcast.lane.b32.xlu1 %v252_v40, 256  ;;  %v815_v40 = vand.u32 2147483647, %v2028_v25 }
  0x3e   :  { %532 = vbcast.lane.b32.xlu1 %v530_v41, 256 }
  0x42   :  { %539 = vbcast.lane.b32.xlu1 %v537_v43, 256 }
  0x46   :  { %546 = vbcast.lane.b32.xlu1 %v544_v44, 256 }
  0x4a   :  { %560 = vbcast.lane.b32.xlu1 %v558_v45, 256 }
  0x8e   :  { %v1944_v46 = vpop.xlane.xlu1 %110  ;;  %v1946_v47 = vpop.xlane.xlu0 %104 }
  0x8f   :  { %vm388_vm10 = vcmp.eq.f32.partialorder %v1859_v2, %v1946_v47  ;;  %vm390_vm11 = vcmp.eq.f32.partialorder %v1854_v1, %v1944_v46  ;;  %v121_v0 = vsub.f32 %v1859_v2, %v1946_v47 }
  0x90   :  { %v394_v15 = vsel %vm388_vm10, %v1956_v52, 12  ;;  %v396_v16 = vsel %vm390_vm11, %v1956_v52, 12 }
  0x91   :  { %v127_v20 = vmul.f32 1.442695, %v121_v0  ;;  %v2021_v24 = vsel %vm102_vm0, %v394_v15, 2147483647 }
  0x92   :  { %v1948_v48 = vpop.xlane.xlu1 %113  ;;  %v1950_v49 = vpop.xlane.xlu0 %107  ;;  %v402_v43 = vshra.s32 %v2021_v24, 16 }
  0x93   :  { %2827 = vst [vmem:[#allocation7_spill] sm:$0xff] %v1948_v48  ;;  %vm389_vm9 = vcmp.eq.f32.partialorder %v1873_v6, %v1950_v49  ;;  %v122_v59 = vsub.f32 %v1873_v6, %v1950_v49  ;;  %v124_v11 = vsub.f32 %v1864_v3, %v1948_v48  ;;  %vm391_vm15 = vcmp.eq.f32.partialorder %v1864_v3, %v1948_v48 }
  0x94   :  { %v397_v29 = vsel %vm391_vm15, %v1956_v52, 12 }
  0x95   :  { %v129_v12 = vmul.f32 1.442695, %v122_v59 }
  0x96   :  { %v1952_v50 = vpop.xlane.xlu1 %119  ;;  %v1954_v51 = vpop.xlane.xlu0 %116 }
  0x97   :  { %2828 = vst [vmem:[#allocation8_spill] sm:$0xff] %v1952_v50  ;;  %vm392_vm1 = vcmp.eq.f32.partialorder %v1887_v10, %v1954_v51  ;;  %1687 = vpow2.f32 %v129_v12  ;;  %v126_v32 = vsub.f32 %v1882_v9, %v1952_v50  ;;  %vm393_vm3 = vcmp.eq.f32.partialorder %v1882_v9, %v1952_v50  ;;  %v2083_v12 = vld [vmem:[%s2809_s3 + $0x8] sm:$0xff] }
  0x98   :  { %v398_v39 = vsel %vm392_vm1, %v1956_v52, 12  ;;  %1689 = vpow2.f32 %v127_v20  ;;  %v2835_v50 = vmov 0.0  }
  0x9a   :  { %v1958_v53 = vpop.permute.xlu1 %54  ;;  %v1960_v54 = vpop.permute.xlu0 %47 }
  0x9b   :  { %2829 = vst [vmem:[#allocation9_spill] sm:$0xff] %v1958_v53  ;;  %2830 = vst [vmem:[#allocation10_spill] sm:$0xff] %v1960_v54  ;;  %vm85_vm7 = vcmp.eq.s32.totalorder %v1956_v52, %v1958_v53  ;;  %vm84_vm8 = vcmp.eq.s32.totalorder %v1956_v52, %v1960_v54 }
  0x9c   :  { %v1641_v55 = vsel %vm85_vm7, 1.0, %v2816_v34  ;;  %v1640_v56 = vsel %vm84_vm8, 1.0, %v2816_v34  ;;  %vm893_vm8 = vcmp.ge.f32.partialorder %v2028_v25, 0.0 }
  0x9d   :  { %v176_v57 = vmul.f32 %v1641_v55, %v1873_v6  ;;  %v175_v58 = vmul.f32 %v1640_v56, %v1859_v2  ;;  %v395_v6 = vsel %vm389_vm9, %v1956_v52, 12  ;;  %v123_v2 = vsub.f32 %v1854_v1, %v1944_v46  ;;  %v2058_v56 = vld [vmem:[%s2809_s3 + $0x10] sm:$0xff] }
  0x9e   :  { %v1974_v60 = vpop.permute.xlu1 %61  ;;  %v1976_v61 = vpop.permute.xlu0 %75  ;;  %v2011_v19 = vsel %vm102_vm0, %v395_v6, 2147483647  ;;  %v2053_v55 = vsel %vm102_vm0, %v397_v29, 2147483647  ;;  %v817_v0 = vand.u32 2147483647, %v2058_v56 }
  0x9f   :  { %2831 = vst [vmem:[#allocation11_spill] sm:$0xff] %v1974_v60  ;;  %2832 = vst [vmem:[#allocation12_spill] sm:$0xff] %v1976_v61  ;;  %vm86_vm12 = vcmp.eq.s32.totalorder %v1956_v52, %v1974_v60  ;;  %v184_v62 = vsel %vm102_vm0, %v176_v57, 0.0  ;;  %v181_v63 = vsel %vm102_vm0, %v175_v58, 0.0  ;;  %vm88_vm13 = vcmp.eq.s32.totalorder %v1956_v52, %v1976_v61 }
  0xa0   :  { %185 = vadd.xlane.f32.xlu1 %v184_v62  ;;  %182 = vadd.xlane.f32.xlu0 %v181_v63  ;;  %v1642_v4 = vsel %vm86_vm12, 1.0, %v2816_v34  ;;  %v1644_v5 = vsel %vm88_vm13, 1.0, %v2816_v34  ;;  %v417_v28 = vshra.s32 %v2011_v19, 16  ;;  %v131_v36 = vmul.f32 1.442695, %v123_v2 }
  0xa1   :  { %v177_v7 = vmul.f32 %v1642_v4, %v1854_v1  ;;  %v179_v8 = vmul.f32 %v1644_v5, %v1887_v10  ;;  %v133_v1 = vmul.f32 1.442695, %v124_v11  ;;  %v137_v57 = vmul.f32 1.442695, %v126_v32  ;;  %v2099_v32 = vld [vmem:[%s2809_s3 + $0x18] sm:$0xff] }
  0xa2   :  { %v1997_v13 = vpop.permute.xlu1 %68  ;;  %v2049_v44 = vcvt.s32.f32 %v417_v28  ;;  %v125_v58 = vsub.f32 %v1887_v10, %v1954_v51  ;;  %v399_v62 = vsel %vm393_vm3, %v1956_v52, 12  ;;  %v821_v63 = vsub.f32 0.0, %v815_v40 }
  0xa3   :  { %2833 = vst [vmem:[#allocation13_spill] sm:$0xff] %v1997_v13  ;;  %vm87_vm14 = vcmp.eq.s32.totalorder %v1956_v52, %v1997_v13  ;;  %v187_v17 = vsel %vm102_vm0, %v177_v7, 0.0  ;;  %v193_v23 = vsel %vm102_vm0, %v179_v8, 0.0  ;;  %1691 = vpow2.f32 %v133_v1 }
  0xa4   :  { %188 = vadd.xlane.f32.xlu0 %v187_v17  ;;  %v1643_v21 = vsel %vm87_vm14, 1.0, %v2816_v34  ;;  %1693 = vpow2.f32 %v131_v36  ;;  %v2069_v4 = vcvt.s32.f32 %v402_v43  ;;  %v447_v6 = vshra.s32 %v2053_v55, 16  ;;  %v1688_v20 = vpop.eup %1687 }
  0xa5   :  { %v178_v22 = vmul.f32 %v1643_v21, %v1864_v3  ;;  %v2034_v3 = vsel %vm102_vm0, %v396_v16, 2147483647  ;;  %1695 = vpow2.f32 %v137_v57  ;;  %v135_v7 = vmul.f32 1.442695, %v125_v58 }
  0xa6   :  { %v2030_v26 = vpop.permute.xlu1 %82  ;;  %v432_v45 = vshra.s32 %v2034_v3, 16  ;;  %v2076_v8 = vsel %vm102_vm0, %v399_v62, 2147483647  ;;  %v827_v11 = vmul.f32 1.442695, %v821_v63  ;;  %v823_v15 = vsub.f32 0.0, %v817_v0 }
  0xa7   :  { %2834 = vst [vmem:[#allocation14_spill] sm:$0xff] %v2030_v26  ;;  %vm89_vm2 = vcmp.eq.s32.totalorder %v1956_v52, %v2030_v26  ;;  %v190_v33 = vsel %vm102_vm0, %v178_v22, 0.0  ;;  %v2087_v17 = vcvt.s32.f32 %v447_v6  ;;  %v477_v2 = vshra.s32 %v2076_v8, 16 }
  0xa8   :  { %191 = vadd.xlane.f32.xlu1 %v190_v33  ;;  %194 = vadd.xlane.f32.xlu0 %v193_v23  ;;  %v1645_v37 = vsel %vm89_vm2, 1.0, %v2816_v34  ;;  %v2071_v5 = vcvt.s32.f32 %v432_v45  ;;  %1697 = vpow2.f32 %v135_v7  ;;  %v816_v21 = vand.u32 2147483647, %v2083_v12  ;;  %v1690_v23 = vpop.eup %1689 }
  0xa9   :  { %v180_v41 = vmul.f32 %v1645_v37, %v1882_v9  ;;  %v2064_v9 = vsel %vm102_vm0, %v398_v39, 2147483647  ;;  %1699 = vpow2.f32 %v827_v11  ;;  %v831_v22 = vmul.f32 1.442695, %v823_v15  ;;  %v2120_v15 = vld [vmem:[%s2810_s4] sm:$0xff] }
  0xaa   :  { %v462_v10 = vshra.s32 %v2064_v9, 16  ;;  %v2093_v1 = vcvt.s32.f32 %v477_v2  ;;  %v142_v29 = vsel %vm102_vm0, %v1688_v20, 0.0  ;;  %v822_v33 = vsub.f32 0.0, %v816_v21 }
  0xab   :  { %v196_v59 = vsel %vm102_vm0, %v180_v41, 0.0  ;;  %1701 = vpow2.f32 %v831_v22  ;;  %v818_v37 = vand.u32 2147483647, %v2099_v32  ;;  %v139_v40 = vsel %vm102_vm0, %v1690_v23, 0.0 }
  0xac   :  { %197 = vadd.xlane.f32.xlu1 %v196_v59  ;;  %420 = vmin.xlane.f32.xlu0 %v2049_v44  ;;  %v2085_v16 = vcvt.s32.f32 %v462_v10  ;;  %v829_v43 = vmul.f32 1.442695, %v822_v33  ;;  %v356_v63 = vsel %vm323_vm4, %v1911_v27, 0.0  ;;  %v574_v7 = vsel %vm323_vm4, %v1925_v35, 0.0  ;;  %v2129_v35 = vld [vmem:[%s2810_s4 + $0x8] sm:$0xff]  ;;  %v2156_v33 = vld [vmem:[%s2810_s4 + $0x20] sm:$0xff] }
  0xad   :  { %v824_v45 = vsub.f32 0.0, %v818_v37  ;;  %v577_v27 = vsel %vm323_vm4, %v1938_v42, 0.0  ;;  %v580_v21 = vsel %vm323_vm4, %v1931_v38, 0.0  ;;  %vm924_vm6 = vcmp.eq.f32.partialorder %v2129_v35, 1.0  ;;  %v2142_v42 = vld [vmem:[%s2810_s4 + $0x18] sm:$0xff] }
  0xae   :  { %1703 = vpow2.f32 %v829_v43  ;;  %v2148_v38 = vsel %vm924_vm6, 1.0, %v2816_v34  ;;  %vm926_vm7 = vcmp.eq.f32.partialorder %v2142_v42, 1.0  ;;  %v1661_v43 = vld [vmem:[%s2808_s2] ss:$0 sm:$0xff]  ;;  %vm927_vm9 = vcmp.eq.f32.partialorder %v2156_v33, 1.0 }
  0xaf   :  { %v833_v0 = vmul.f32 1.442695, %v824_v45  ;;  %v2173_v45 = vld [vmem:[%s2810_s4 + $0x28] sm:$0xff]  ;;  %vm895_vm11 = vcmp.ge.f32.partialorder %v2058_v56, 0.0  ;;  %vm894_vm12 = vcmp.ge.f32.partialorder %v2083_v12, 0.0  ;;  %v859_v54 = vmax.f32 %v2058_v56, 0.0 }
  0xb0   :  { %405 = vmin.xlane.f32.xlu1 %v2069_v4  ;;  %435 = vmin.xlane.f32.xlu0 %v2071_v5  ;;  %v1692_v28 = vpop.eup %1691  ;;  %vm928_vm10 = vcmp.eq.f32.partialorder %v2173_v45, 1.0  ;;  %vm896_vm14 = vcmp.ge.f32.partialorder %v2099_v32, 0.0  ;;  %vm941_vm15 = vcmp.lt.f32.partialorder %v2120_v15, 1.0  ;;  %vm942_vm2 = vcmp.lt.f32.partialorder %v2129_v35, 1.0 }
  0xb1   :  { %v1694_v36 = vpop.eup %1693  ;;  %v148_v39 = vsel %vm102_vm0, %v1692_v28, 0.0  ;;  %1705 = vpow2.f32 %v833_v0  ;;  %vm944_vm3 = vcmp.lt.f32.partialorder %v2142_v42, 1.0  ;;  %vm1274_vm6 = vcmask 130052  }
  0xb2   :  { %v1696_v41 = vpop.eup %1695  ;;  %v145_v58 = vsel %vm102_vm0, %v1694_v36, 0.0  ;;  %v869_v36 = vsub.f32 0.0, %v2028_v25 }
  0xb3   :  { %v154_v57 = vsel %vm102_vm0, %v1696_v41, 0.0 }
  0xb4   :  { %465 = vmin.xlane.f32.xlu1 %v2085_v16  ;;  %450 = vmin.xlane.f32.xlu0 %v2087_v17 }
  0xb5   :  { %v1698_v59 = vpop.eup %1697 }
  0xb6   :  { %v2107_v62 = vpop.eup %1699  ;;  %v151_v10 = vsel %vm102_vm0, %v1698_v59, 0.0  ;;  %vm923_vm0 = vcmp.eq.f32.partialorder %v2120_v15, 1.0 }
  0xb7   :  { %v839_v6 = vadd.f32 1.0, %v2107_v62  ;;  %v2136_v22 = vsel %vm923_vm0, 1.0, %v2816_v34  ;;  %v911_v0 = vsel %vm893_vm8, %v2107_v62, 1.0  ;;  %v899_v61 = vsel %vm893_vm8, 1.0, %v2107_v62 }
  0xb8   :  { %143 = vadd.xlane.f32.xlu1 %v142_v29  ;;  %480 = vmin.xlane.f32.xlu0 %v2093_v1  ;;  %v2115_v11 = vpop.eup %1701  ;;  %v1008_v28 = vsel %vm1007_vm5, %v2136_v22, 0.0 }
  0xb9   :  { %1707 = vlog2.f32 %v839_v6  ;;  %v841_v2 = vadd.f32 1.0, %v2115_v11 }
  0xba   :  { %1709 = vrcp.f32 %v839_v6 }
  0xbb   :  { %v2131_v20 = vpop.eup %1703  ;;  %1711 = vlog2.f32 %v841_v2 }
  0xbc   :  { %149 = vadd.xlane.f32.xlu1 %v148_v39  ;;  %140 = vadd.xlane.f32.xlu0 %v139_v40  ;;  %v840_v23 = vadd.f32 1.0, %v2131_v20  ;;  %1713 = vrcp.f32 %v841_v2  ;;  %v1011_v39 = vsel %vm1007_vm5, %v2148_v38, 0.0  ;;  %v2162_v40 = vsel %vm926_vm7, 1.0, %v2816_v34 }
  0xbe   :  { %v2150_v29 = vpop.eup %1705  ;;  %1715 = vlog2.f32 %v840_v23 }
  0xbf   :  { %v842_v41 = vadd.f32 1.0, %v2150_v29  ;;  %1717 = vrcp.f32 %v840_v23  ;;  %v2189_v23 = vsel %vm928_vm10, 1.0, %v2816_v34 }
  0xc0   :  { %155 = vadd.xlane.f32.xlu1 %v154_v57  ;;  %146 = vadd.xlane.f32.xlu0 %v145_v58  ;;  %v875_v58 = vmax.f32 %v869_v36, 0.0 }
  0xc1   :  { %1719 = vlog2.f32 %v842_v41 }
  0xc2   :  { %1721 = vrcp.f32 %v842_v41  ;;  %v1803_v41 = vmov 0  }
  0xc3   :  { %1686 = vset.pattern.permute.xlu1 %v1803_v41  ;;  %1685 = vset.pattern.permute.xlu0 %v1803_v41 }
  0xc4   :  { %152 = vadd.xlane.f32.xlu0 %v151_v10  ;;  %357 = vadd.xlane.f32.xlu1 %v356_v63  ;;  %v1017_v63 = vsel %vm1007_vm5, %v2162_v40, 0.0  ;;  %v871_v10 = vsub.f32 0.0, %v2058_v56 }
  0xc6   :  { %v1708_v37 = vpop.eup %1707  ;;  %v877_v36 = vmax.f32 %v871_v10, 0.0 }
  0xc7   :  { %v846_v57 = vmul.f32 0.6931472, %v1708_v37  ;;  %v1710_v59 = vpop.eup %1709 }
  0xc8   :  { %575 = vadd.xlane.f32.xlu1 %v574_v7  ;;  %v1712_v6 = vpop.eup %1711  ;;  %v2182_v7 = vsel %vm927_vm9, 1.0, %v2816_v34  ;;  %v917_v2 = vmul.f32 %v1710_v59, %v911_v0  ;;  %v905_v41 = vmul.f32 %v1710_v59, %v899_v61  ;;  %vm946_vm9 = vcmp.lt.f32.partialorder %v2173_v45, 1.0 }
  0xc9   :  { %v1714_v37 = vpop.eup %1713  ;;  %v863_v25 = vadd.f32 %v857_v18, %v846_v57 }
  0xca   :  { %v965_v0 = vmul.f32 %v917_v2, %v917_v2 }
  0xcb   :  { %v1716_v34 = vpop.eup %1715  ;;  %v983_v59 = vsub.f32 0.0, %v863_v25 }
  0xcc   :  { %578 = vadd.xlane.f32.xlu1 %v577_v27  ;;  %v881_v27 = vadd.f32 %v875_v58, %v846_v57  ;;  %v1023_v58 = vsel %vm1007_vm5, %v2189_v23, 0.0  ;;  %v848_v13 = vmul.f32 0.6931472, %v1716_v34  ;;  %v1718_v62 = vpop.eup %1717  ;;  %v362_v34 = vsel %vm323_vm4, %v1916_v30, 0.0 }
  0xcd   :  { %v914_v30 = vsel %vm896_vm14, %v2150_v29, 1.0 }
  0xd0   :  { %581 = vadd.xlane.f32.xlu1 %v580_v21  ;;  %v1020_v21 = vsel %vm1007_vm5, %v2182_v7, 0.0 }
  0xd4   :  { %1009 = vadd.xlane.f32.xlu1 %v1008_v28  ;;  %v850_v28 = vmul.f32 0.6931472, %v1712_v6 }
  0xd6   :  { %v883_v10 = vadd.f32 %v877_v36, %v850_v28  ;;  %v912_v36 = vsel %vm894_vm12, %v2131_v20, 1.0 }
  0xd7   :  { %v918_v61 = vmul.f32 %v1718_v62, %v912_v36 }
  0xd8   :  { %1012 = vadd.xlane.f32.xlu1 %v1011_v39  ;;  %v913_v39 = vsel %vm895_vm11, %v2115_v11, 1.0 }
  0xd9   :  { %v919_v6 = vmul.f32 %v1714_v37, %v913_v39  ;;  %v961_v39 = vsub.f32 0.0, %v883_v10  ;;  %v865_v10 = vadd.f32 %v859_v54, %v850_v28 }
  0xda   :  { %762 = vbcast.lane.b32.xlu0 %v1661_v43, 256  ;;  %v870_v43 = vsub.f32 0.0, %v2083_v12 }
  0xdb   :  { %v967_v60 = vmul.f32 %v919_v6, %v919_v6 }
  0xdc   :  { %1018 = vadd.xlane.f32.xlu1 %v1017_v63  ;;  %v959_v63 = vsub.f32 0.0, %v881_v27  ;;  %v876_v26 = vmax.f32 %v870_v43, 0.0  ;;  %v811_v27 = vld [vmem:[%s2810_s4 + $0x10] sm:$0xff]  ;;  %v901_v43 = vsel %vm895_vm11, 1.0, %v2115_v11 }
  0xdd   :  { %vm925_vm13 = vcmp.eq.f32.partialorder %v811_v27, 1.0  ;;  %v907_v6 = vmul.f32 %v1714_v37, %v901_v43  ;;  %v985_v37 = vsub.f32 0.0, %v865_v10  ;;  %vm943_vm1 = vcmp.lt.f32.partialorder %v811_v27, 1.0 }
  0xde   :  { %v971_v2 = vmul.f32 %v965_v0, %v959_v63  ;;  %v882_v57 = vadd.f32 %v876_v26, %v848_v13  ;;  %v973_v63 = vmul.f32 %v967_v60, %v961_v39  ;;  %v989_v0 = vmul.f32 %v905_v41, %v905_v41 }
  0xdf   :  { %v1664_v48 = vsel %vm925_vm13, 1.0, %v2835_v50  ;;  %v858_v60 = vmax.f32 %v2083_v12, 0.0  ;;  %v1668_v39 = vsel %vm941_vm15, 1.0, %v2835_v50  ;;  %v900_v41 = vsel %vm894_vm12, 1.0, %v2131_v20  ;;  %v2236_v12 = vld [vmem:[%s2809_s3 + $0x28] sm:$0xff] }
  0xe0   :  { %1021 = vadd.xlane.f32.xlu1 %v1020_v21  ;;  %v359_v21 = vsel %vm323_vm4, %v1918_v31, 0.0  ;;  %v872_v31 = vsub.f32 0.0, %v2099_v32  ;;  %v977_v18 = vmul.f32 %v2136_v22, %v971_v2  ;;  %v960_v22 = vsub.f32 0.0, %v882_v57 }
  0xe1   :  { %v979_v54 = vmul.f32 %v1664_v48, %v973_v63  ;;  %v995_v28 = vmul.f32 %v989_v0, %v983_v59  ;;  %v991_v2 = vmul.f32 %v907_v6, %v907_v6  ;;  %v1670_v59 = vsel %vm943_vm1, 1.0, %v2835_v50 }
  0xe2   :  { %v878_v56 = vmax.f32 %v872_v31, 0.0  ;;  %v1068_v26 = vsel %vm1007_vm5, %v977_v18, 0.0  ;;  %v864_v31 = vadd.f32 %v858_v60, %v848_v13  ;;  %v860_v63 = vmax.f32 %v2099_v32, 0.0 }
  0xe3   :  { %v1074_v43 = vsel %vm1007_vm5, %v979_v54, 0.0  ;;  %v997_v18 = vmul.f32 %v991_v2, %v985_v37  ;;  %v902_v13 = vsel %vm896_vm14, 1.0, %v2150_v29  ;;  %v1014_v20 = vsel %vm1007_vm5, %v1664_v48, 0.0  ;;  %v2252_v2 = vpop.permute.xlu1 %226 }
  0xe4   :  { %1024 = vadd.xlane.f32.xlu1 %v1023_v58  ;;  %v1720_v58 = vpop.eup %1719  ;;  %v984_v0 = vsub.f32 0.0, %v864_v31  ;;  %v820_v6 = vand.u32 2147483647, %v2236_v12  ;;  %vm898_vm7 = vcmp.ge.f32.partialorder %v2236_v12, 0.0  ;;  %vm1299_vm13 = vcmask 122880  }
  0xe5   :  { %v852_v53 = vmul.f32 0.6931472, %v1720_v58  ;;  %v1722_v11 = vpop.eup %1721  ;;  %v1001_v58 = vmul.f32 %v1668_v39, %v995_v28  ;;  %v1003_v10 = vmul.f32 %v1670_v59, %v997_v18  ;;  %v1669_v28 = vsel %vm942_vm2, 1.0, %v2835_v50  ;;  %v2259_v39 = vld [vmem:[%s2809_s3 + $0x20] sm:$0xff] }
  0xe6   :  { %v920_v25 = vmul.f32 %v1722_v11, %v914_v30  ;;  %vm897_vm10 = vcmp.ge.f32.partialorder %v2259_v39, 0.0  ;;  %vm945_vm1 = vcmp.lt.f32.partialorder %v2156_v33, 1.0 }
  0xe7   :  { %v884_v36 = vadd.f32 %v878_v56, %v852_v53  ;;  %v1131_v48 = vsel %vm1007_vm5, %v1003_v10, 0.0  ;;  %v2261_v42 = vpop.permute.xlu1 %233  ;;  %v874_v10 = vsub.f32 0.0, %v2236_v12 }
  0xe8   :  { %360 = vadd.xlane.f32.xlu1 %v359_v21  ;;  %v966_v21 = vmul.f32 %v918_v61, %v918_v61  ;;  %v968_v61 = vmul.f32 %v920_v25, %v920_v25 }
  0xe9   :  { %v962_v57 = vsub.f32 0.0, %v884_v36  ;;  %v1671_v36 = vsel %vm944_vm3, 1.0, %v2835_v50 }
  0xea   :  { %v972_v15 = vmul.f32 %v966_v21, %v960_v22  ;;  %v908_v22 = vmul.f32 %v1722_v11, %v902_v13 }
  0xeb   :  { %v974_v56 = vmul.f32 %v968_v61, %v962_v57  ;;  %v2269_v61 = vpop.permute.xlu0 %219 }
  0xec   :  { %363 = vadd.xlane.f32.xlu1 %v362_v34  ;;  %v906_v34 = vmul.f32 %v1718_v62, %v900_v41  ;;  %v978_v27 = vmul.f32 %v2148_v38, %v972_v15  ;;  %v1125_v62 = vsel %vm1007_vm5, %v1001_v58, 0.0  ;;  %v826_v38 = vsub.f32 0.0, %v820_v6 }
  0xed   :  { %v980_v29 = vmul.f32 %v2162_v40, %v974_v56  ;;  %v992_v54 = vmul.f32 %v908_v22, %v908_v22  ;;  %v819_v41 = vand.u32 2147483647, %v2259_v39 }
  0xee   :  { %v990_v30 = vmul.f32 %v906_v34, %v906_v34  ;;  %v1071_v32 = vsel %vm1007_vm5, %v978_v27, 0.0 }
  0xef   :  { %v1077_v35 = vsel %vm1007_vm5, %v980_v29, 0.0  ;;  %v825_v31 = vsub.f32 0.0, %v819_v41  ;;  %v2278_v13 = vpop.permute.xlu0 %247 }
  0xf0   :  { %1069 = vadd.xlane.f32.xlu1 %v1068_v26  ;;  %v866_v26 = vadd.f32 %v860_v63, %v852_v53  ;;  %v996_v21 = vmul.f32 %v990_v30, %v984_v0  ;;  %v837_v53 = vmul.f32 1.442695, %v826_v38  ;;  %v2276_v63 = vld [vmem:[%s2811_s5 + $0x20] sm:$0xff]  ;;  %v880_v38 = vmax.f32 %v874_v10, 0.0 }
  0xf1   :  { %v835_v58 = vmul.f32 1.442695, %v825_v31  ;;  %vm1266_vm0 = vcmp.ne.f32.partialorder %v2276_v63, 0.0 }
  0xf2   :  { %v986_v60 = vsub.f32 0.0, %v866_v26  ;;  %v1002_v11 = vmul.f32 %v1669_v28, %v996_v21  ;;  %1723 = vpow2.f32 %v837_v53  ;;  %v2300_v28 = vld [vmem:[%s2811_s5 + $0x8] sm:$0xff] }
  0xf3   :  { %1725 = vpow2.f32 %v835_v58  ;;  %v2286_v0 = vpop.permute.xlu0 %525  ;;  %vm1265_vm8 = vcmp.ne.f32.partialorder %v2300_v28, 0.0 }
  0xf4   :  { %1075 = vadd.xlane.f32.xlu1 %v1074_v43  ;;  %v998_v37 = vmul.f32 %v992_v54, %v986_v60  ;;  %v1128_v40 = vsel %vm1007_vm5, %v1002_v11, 0.0  ;;  %v2265_v43 = vpop.permute.xlu1 %240  ;;  %v862_v60 = vmax.f32 %v2236_v12, 0.0 }
  0xf6   :  { %v1004_v25 = vmul.f32 %v1671_v36, %v998_v37 }
  0xf8   :  { %1126 = vadd.xlane.f32.xlu1 %v1125_v62  ;;  %v1134_v15 = vsel %vm1007_vm5, %v1004_v25, 0.0  ;;  %v2267_v18 = vpop.permute.xlu1 %254  ;;  %v1676_v62 = vsel %vm1266_vm0, 1.0, %v2835_v50  ;;  %vm349_vm0 = vcmask 1042434  }
  0xf9   :  { %1015 = vadd.xlane.f32.xlu0 %v1014_v20  ;;  %v1282_v6 = vsel %vm1274_vm6, %v1676_v62, -inf  ;;  %v416_v62 = vand.u32 65535, %v2011_v19 }
  0xfa   :  { %v1283_v22 = vrot.slane %v1282_v6, 4 }
  0xfb   :  { %v418_v19 = vcvt.s32.f32 %v416_v62 }
  0xfc   :  { %1132 = vadd.xlane.f32.xlu1 %v1131_v48  ;;  %v2271_v59 = vpop.permute.xlu1 %532  ;;  %v1284_v54 = vmax.f32 %v1282_v6, %v1283_v22 }
  0xfd   :  { %1072 = vadd.xlane.f32.xlu0 %v1071_v32  ;;  %v2294_v32 = vpop.permute.xlu0 %553 }
  0xfe   :  { %2836 = vst [vmem:[#allocation15_spill] sm:$0xff] %v2294_v32  ;;  %v1285_v41 = vrot.slane %v1284_v54, 2 }
  0xff   :  { %v1724_v34 = vpop.eup %1723 }
 0x100   :  { %v844_v57 = vadd.f32 1.0, %v1724_v34  ;;  %v2281_v20 = vpop.permute.xlu1 %539  ;;  %v2283_v27 = vpop.eup %1725  ;;  %v916_v21 = vsel %vm898_vm7, %v1724_v34, 1.0  ;;  %v904_v36 = vsel %vm898_vm7, 1.0, %v1724_v34  ;;  %vm1041_vm7 = vcmask 130112  }
 0x101   :  { %1078 = vadd.xlane.f32.xlu0 %v1077_v35  ;;  %v843_v56 = vadd.f32 1.0, %v2283_v27 }
 0x102   :  { %1727 = vlog2.f32 %v844_v57 }
 0x103   :  { %1729 = vrcp.f32 %v844_v57  ;;  %v1675_v57 = vsel %vm1265_vm8, 1.0, %v2835_v50 }
 0x104   :  { %v2291_v26 = vpop.permute.xlu1 %546  ;;  %1731 = vlog2.f32 %v843_v56 }
 0x105   :  { %1129 = vadd.xlane.f32.xlu0 %v1128_v40  ;;  %1733 = vrcp.f32 %v843_v56 }
 0x108   :  { %v2302_v53 = vpop.permute.xlu1 %560 }
 0x109   :  { %1135 = vadd.xlane.f32.xlu0 %v1134_v15 }
 0x10f   :  { %v1728_v30 = vpop.eup %1727 }
 0x110   :  { %v856_v48 = vmul.f32 0.6931472, %v1728_v30  ;;  %v1730_v29 = vpop.eup %1729  ;;  %v1286_v30 = vmax.f32 %v1284_v54, %v1285_v41 }
 0x111   :  { %v922_v37 = vmul.f32 %v1730_v29, %v916_v21  ;;  %v910_v25 = vmul.f32 %v1730_v29, %v904_v36  ;;  %v1732_v29 = vpop.eup %1731  ;;  %v401_v21 = vand.u32 65535, %v2021_v24  ;;  %v915_v24 = vsel %vm897_vm10, %v2283_v27, 1.0 }
 0x112   :  { %v886_v11 = vadd.f32 %v880_v38, %v856_v48  ;;  %v868_v40 = vadd.f32 %v862_v60, %v856_v48  ;;  %v873_v48 = vsub.f32 0.0, %v2259_v39  ;;  %v1275_v38 = vsel %vm1274_vm6, %v1675_v57, -inf }
 0x113   :  { %v970_v58 = vmul.f32 %v922_v37, %v922_v37  ;;  %v994_v6 = vmul.f32 %v910_v25, %v910_v25  ;;  %v1276_v54 = vrot.slane %v1275_v38, 4  ;;  %v1673_v25 = vsel %vm946_vm9, 1.0, %v2835_v50 }
 0x114   :  { %v964_v31 = vsub.f32 0.0, %v886_v11  ;;  %v988_v10 = vsub.f32 0.0, %v868_v40  ;;  %v1287_v11 = vrot.slane %v1286_v30, 1  ;;  %v854_v41 = vmul.f32 0.6931472, %v1732_v29 }
 0x115   :  { %v431_v57 = vand.u32 65535, %v2034_v3  ;;  %v403_v62 = vcvt.s32.f32 %v401_v21  ;;  %v861_v3 = vmax.f32 %v2259_v39, 0.0 }
 0x116   :  { %v976_v22 = vmul.f32 %v970_v58, %v964_v31  ;;  %v1000_v60 = vmul.f32 %v994_v6, %v988_v10  ;;  %v879_v31 = vmax.f32 %v873_v48, 0.0  ;;  %v1734_v58 = vpop.eup %1733  ;;  %v1288_v6 = vmax.f32 %v1286_v30, %v1287_v11 }
 0x117   :  { %v903_v30 = vsel %vm897_vm10, 1.0, %v2283_v27  ;;  %v433_v21 = vcvt.s32.f32 %v431_v57 }
 0x118   :  { %v982_v40 = vmul.f32 %v2189_v23, %v976_v22  ;;  %v1006_v10 = vmul.f32 %v1673_v25, %v1000_v60  ;;  %v1277_v23 = vmax.f32 %v1275_v38, %v1276_v54  ;;  %v885_v32 = vadd.f32 %v879_v31, %v854_v41 }
 0x119   :  { %v446_v60 = vand.u32 65535, %v2053_v55  ;;  %v867_v31 = vadd.f32 %v861_v3, %v854_v41 }
 0x11a   :  { %v1083_v48 = vsel %vm1007_vm5, %v982_v40, 0.0  ;;  %v1140_v11 = vsel %vm1007_vm5, %v1006_v10, 0.0  ;;  %v963_v27 = vsub.f32 0.0, %v885_v32 }
 0x11b   :  { %v448_v57 = vcvt.s32.f32 %v446_v60  ;;  %v987_v41 = vsub.f32 0.0, %v867_v31 }
 0x129   :  { %v2304_v35 = vpop.xlane.xlu0 %182  ;;  %v2307_v12 = vpop.xlane.xlu1 %185 }
 0x12d   :  { %v2309_v15 = vpop.xlane.xlu0 %188 }
 0x131   :  { %v2313_v34 = vpop.xlane.xlu1 %191  ;;  %v2315_v56 = vpop.xlane.xlu0 %194 }
 0x135   :  { %v2322_v37 = vpop.xlane.xlu1 %197  ;;  %v2324_v36 = vpop.xlane.xlu0 %420 }
 0x136   :  { %vm422_vm11 = vcmp.eq.f32.partialorder %v2049_v44, %v2324_v36  ;;  %v2342_v44 = vld [vmem:[%s2811_s5 + $0x28] sm:$0x1] }
 0x137   :  { %v423_v45 = vsel %vm422_vm11, %v418_v19, inf  ;;  %v921_v19 = vmul.f32 %v1734_v58, %v915_v24  ;;  %v2355_v54 = vmul.f32 %v1288_v6, %v2342_v44  ;;  %v909_v24 = vmul.f32 %v1734_v58, %v903_v30 }
 0x138   :  { %424 = vmin.xlane.f32.xlu1 %v423_v45  ;;  %v461_v45 = vand.u32 65535, %v2064_v9 }
 0x139   :  { %v2334_v22 = vpop.xlane.xlu1 %405  ;;  %v2336_v29 = vpop.xlane.xlu0 %435  ;;  %v969_v25 = vmul.f32 %v921_v19, %v921_v19  ;;  %v993_v58 = vmul.f32 %v909_v24, %v909_v24 }
 0x13a   :  { %vm407_vm12 = vcmp.eq.f32.partialorder %v2069_v4, %v2334_v22  ;;  %vm437_vm14 = vcmp.eq.f32.partialorder %v2071_v5, %v2336_v29  ;;  %v1278_v4 = vrot.slane %v1277_v23, 2  ;;  %v1303_v5 = vsel %vm1299_vm13, %v2355_v54, 0.0 }
 0x13b   :  { %v408_v38 = vsel %vm407_vm12, %v403_v62, inf  ;;  %v438_v55 = vsel %vm437_vm14, %v433_v21, inf  ;;  %v476_v62 = vand.u32 65535, %v2076_v8  ;;  %v975_v32 = vmul.f32 %v969_v25, %v963_v27 }
 0x13c   :  { %409 = vmin.xlane.f32.xlu0 %v408_v38  ;;  %1084 = vadd.xlane.f32.xlu1 %v1083_v48  ;;  %v1279_v48 = vmax.f32 %v1277_v23, %v1278_v4  ;;  %v463_v19 = vcvt.s32.f32 %v461_v45  ;;  %v999_v38 = vmul.f32 %v993_v58, %v987_v41  ;;  %v1672_v21 = vsel %vm945_vm1, 1.0, %v2835_v50 }
 0x13d   :  { %v2357_v40 = vpop.xlane.xlu1 %465  ;;  %v2359_v39 = vpop.xlane.xlu0 %450  ;;  %v478_v3 = vcvt.s32.f32 %v476_v62  ;;  %v981_v30 = vmul.f32 %v2182_v7, %v975_v32 }
 0x13e   :  { %vm452_vm15 = vcmp.eq.f32.partialorder %v2087_v17, %v2359_v39  ;;  %vm467_vm2 = vcmp.eq.f32.partialorder %v2085_v16, %v2357_v40  ;;  %v1280_v23 = vrot.slane %v1279_v48, 1  ;;  %v1005_v27 = vmul.f32 %v1672_v21, %v999_v38 }
 0x13f   :  { %v453_v9 = vsel %vm452_vm15, %v448_v57, inf  ;;  %v468_v60 = vsel %vm467_vm2, %v463_v19, inf  ;;  %v1080_v16 = vsel %vm1007_vm5, %v981_v30, 0.0 }
 0x140   :  { %1141 = vadd.xlane.f32.xlu1 %v1140_v11  ;;  %439 = vmin.xlane.f32.xlu0 %v438_v55  ;;  %v1281_v25 = vmax.f32 %v1279_v48, %v1280_v23  ;;  %v1137_v31 = vsel %vm1007_vm5, %v1005_v27, 0.0  ;;  %vm316_vm5 = vcmask 1041409   ;;  %v1036_v23 = vadd.s32 4294967288, %v1956_v52 }
 0x141   :  { %v144_v10 = vpop.xlane.xlu1 %143  ;;  %v2367_v6 = vpop.xlane.xlu0 %480 }
 0x142   :  { %1735 = vlog2.f32 %v144_v10  ;;  %vm482_vm3 = vcmp.eq.f32.partialorder %v2093_v1, %v2367_v6  ;;  %v2380_v1 = vld [vmem:[%s2811_s5 + $0x10] sm:$0x1]  ;;  %v2392_v10 = vsub.s32 %v1956_v52, %v1893_v14 }
 0x143   :  { %v483_v33 = vsel %vm482_vm3, %v478_v3, inf  ;;  %v2384_v24 = vmul.f32 %v1281_v25, %v2380_v1  ;;  %v2409_v25 = vsub.s32 %v1036_v23, %v1893_v14 }
 0x144   :  { %1304 = vadd.xlane.f32.xlu1 %v1303_v5  ;;  %454 = vmin.xlane.f32.xlu0 %v453_v9 }
 0x145   :  { %v150_v8 = vpop.xlane.xlu1 %149  ;;  %v141_v17 = vpop.xlane.xlu0 %140  ;;  %v1300_v57 = vsel %vm1299_vm13, %v2384_v24, 0.0 }
 0x148   :  { %469 = vmin.xlane.f32.xlu0 %v468_v60  ;;  %484 = vmin.xlane.f32.xlu1 %v483_v33 }
 0x149   :  { %v156_v11 = vpop.xlane.xlu1 %155  ;;  %v147_v4 = vpop.xlane.xlu0 %146 }
 0x14a   :  { %1737 = vlog2.f32 %v147_v4 }
 0x14b   :  { %1739 = vlog2.f32 %v141_v17 }
 0x14c   :  { %1081 = vadd.xlane.f32.xlu0 %v1080_v16 }
 0x14d   :  { %v153_v7 = vpop.xlane.xlu0 %152  ;;  %v2386_v55 = vpop.xlane.xlu1 %357 }
 0x14e   :  { %1741 = vlog2.f32 %v153_v7 }
 0x14f   :  { %v1736_v45 = vpop.eup %1735  ;;  %1743 = vlog2.f32 %v150_v8 }
 0x150   :  { %v160_v5 = vmul.f32 0.6931472, %v1736_v45  ;;  %1138 = vadd.xlane.f32.xlu0 %v1137_v31  ;;  %1745 = vlog2.f32 %v156_v11 }
 0x151   :  { %v576_v62 = vpop.xlane.xlu1 %575 }
 0x152   :  { %v170_v32 = vadd.f32 %v160_v5, %v1950_v49  ;;  %v589_v58 = vrot.slane %v576_v62, %v2392_v10  ;;  %v2837_v62 = vld [vmem:[#allocation7_spill] sm:$0xff] }
 0x154   :  { %1301 = vadd.xlane.f32.xlu0 %v1300_v57  ;;  %v200_v41 = vsub.f32 %v170_v32, %v2307_v12 }
 0x155   :  { %v579_v48 = vpop.xlane.xlu1 %578 }
 0x156   :  { %v263_v9 = vmul.f32 %v2252_v2, %v200_v41  ;;  %v593_v19 = vrot.slane %v579_v48, %v2392_v10 }
 0x157   :  { %v1738_v8 = vpop.eup %1737 }
 0x158   :  { %v598_v17 = vsel %vm316_vm5, %v593_v19, %v589_v58  ;;  %v1740_v3 = vpop.eup %1739  ;;  %v162_v30 = vmul.f32 0.6931472, %v1738_v8 }
 0x159   :  { %278 = vperm.xlu1 %1686, %v263_v9   ;;  %v582_v38 = vpop.xlane.xlu1 %581  ;;  %v158_v60 = vmul.f32 0.6931472, %v1740_v3 }
 0x15a   :  { %v597_v49 = vrot.slane %v582_v38, %v2392_v10  ;;  %v171_v21 = vadd.f32 %v162_v30, %v1944_v46  ;;  %v371_v30 = vrot.slane %v2386_v55, %v2392_v10 }
 0x15b   :  { %v1742_v12 = vpop.eup %1741  ;;  %v169_v46 = vadd.f32 %v158_v60, %v1946_v47  ;;  %v2437_v60 = vpop.permute.xlu0 %762 }
 0x15c   :  { %v166_v2 = vmul.f32 0.6931472, %v1742_v12  ;;  %v2404_v33 = vsel %vm349_vm0, %v597_v49, %v598_v17  ;;  %v1744_v11 = vpop.eup %1743  ;;  %v201_v4 = vsub.f32 %v171_v21, %v2309_v15 }
 0x15d   :  { %v1010_v16 = vpop.xlane.xlu1 %1009  ;;  %v164_v7 = vmul.f32 0.6931472, %v1744_v11  ;;  %v1746_v5 = vpop.eup %1745 }
 0x15e   :  { %v173_v27 = vadd.f32 %v166_v2, %v1954_v51  ;;  %v264_v52 = vmul.f32 %v2261_v42, %v201_v4  ;;  %v1035_v45 = vrot.slane %v1010_v16, %v2392_v10  ;;  %v168_v32 = vmul.f32 0.6931472, %v1746_v5 }
 0x15f   :  { %v172_v14 = vadd.f32 %v164_v7, %v2837_v62  ;;  %v199_v42 = vsub.f32 %v169_v46, %v2304_v35 }
 0x160   :  { %v203_v31 = vsub.f32 %v173_v27, %v2315_v56  ;;  %281 = vperm.xlu1 %1686, %v264_v52   ;;  %v2838_v56 = vld [vmem:[#allocation8_spill] sm:$0xff] }
 0x161   :  { %v1013_v57 = vpop.xlane.xlu1 %1012  ;;  %v174_v58 = vadd.f32 %v168_v32, %v2838_v56  ;;  %v262_v48 = vmul.f32 %v2269_v61, %v199_v42  ;;  %v202_v9 = vsub.f32 %v172_v14, %v2313_v34 }
 0x162   :  { %v266_v15 = vmul.f32 %v2278_v13, %v203_v31  ;;  %v1040_v51 = vrot.slane %v1013_v57, %v2409_v25 }
 0x163   :  { %v265_v13 = vmul.f32 %v2265_v43, %v202_v9  ;;  %v204_v8 = vsub.f32 %v174_v58, %v2322_v37 }
 0x164   :  { %v1042_v41 = vsel %vm1041_vm7, %v1040_v51, %v1035_v45  ;;  %287 = vperm.xlu1 %1686, %v266_v15  }
 0x165   :  { %v1019_v47 = vpop.xlane.xlu1 %1018  ;;  %v267_v38 = vmul.f32 %v2267_v18, %v204_v8  ;;  %v427_v8 = vcvt.f32.s32 %v2324_v36 }
 0x166   :  { %v1050_v55 = vrot.slane %v1019_v47, %v2409_v25 }
 0x169   :  { %v1022_v19 = vpop.xlane.xlu1 %1021 }
 0x16a   :  { %275 = vperm.xlu0 %1685, %v262_v48   ;;  %v1055_v17 = vrot.slane %v1022_v19, %v2392_v10 }
 0x16d   :  { %v1025_v3 = vpop.xlane.xlu1 %1024 }
 0x16e   :  { %284 = vperm.xlu0 %1685, %v265_v13   ;;  %v1059_v35 = vrot.slane %v1025_v3, %v2409_v25  ;;  %v2467_v13 = vld [vmem:[%s2811_s5 + $0x18] sm:$0xff]  ;;  %v1391_v3 = vmul.f32 0.5, %v2276_v63 }
 0x170   :  { %v1060_v61 = vsel %vm1041_vm7, %v1059_v35, %v1055_v17  ;;  %v1373_v17 = vmul.f32 0.5, %v2467_v13  ;;  %v412_v35 = vcvt.f32.s32 %v2334_v22 }
 0x171   :  { %v361_v34 = vpop.xlane.xlu1 %360 }
 0x172   :  { %290 = vperm.xlu0 %1685, %v267_v38   ;;  %v375_v49 = vrot.slane %v361_v34, %v2392_v10  ;;  %v428_v38 = vshll.u32 %v427_v8, 16  ;;  %v2476_v34 = vld [vmem:[%s2811_s5] sm:$0xff]  ;;  %v413_v36 = vshll.u32 %v412_v35, 16 }
 0x174   :  { %v380_v43 = vsel %vm316_vm5, %v375_v49, %v371_v30  ;;  %v1379_v49 = vrot.slane %v1373_v17, 2 }
 0x175   :  { %v364_v37 = vpop.xlane.xlu1 %363 }
 0x176   :  { %v379_v23 = vrot.slane %v364_v37, %v2392_v10  ;;  %v442_v37 = vcvt.f32.s32 %v2336_v29  ;;  %v2492_v29 = vadd.f32 %v1379_v49, %v2467_v13 }
 0x178   :  { %v2435_v12 = vsel %vm349_vm0, %v379_v23, %v380_v43  ;;  %v1397_v43 = vrot.slane %v1391_v3, 2 }
 0x179   :  { %v1070_v21 = vpop.xlane.xlu1 %1069 }
 0x17a   :  { %v1095_v16 = vrot.slane %v1070_v21, %v2392_v10  ;;  %v472_v21 = vcvt.f32.s32 %v2357_v40  ;;  %v2496_v40 = vsub.f32 %v2276_v63, %v1397_v43 }
 0x17d   :  { %v1076_v2 = vpop.xlane.xlu1 %1075 }
 0x17e   :  { %v1104_v5 = vrot.slane %v1076_v2, %v2392_v10  ;;  %v1390_v2 = vmul.f32 0.5, %v2300_v28 }
 0x181   :  { %v1127_v46 = vpop.xlane.xlu1 %1126 }
 0x182   :  { %v1016_v18 = vpop.xlane.xlu0 %1015  ;;  %v1152_v62 = vrot.slane %v1127_v46, %v2392_v10 }
 0x183   :  { %v1046_v11 = vrot.slane %v1016_v18, %v2392_v10  ;;  %v1372_v18 = vmul.f32 0.5, %v2476_v34 }
 0x185   :  { %v1051_v4 = vsel %vm1041_vm7, %v1050_v55, %v1046_v11  ;;  %v1133_v32 = vpop.xlane.xlu1 %1132  ;;  %v2839_v11 = vld [vmem:[#allocation9_spill] sm:$0xff] }
 0x186   :  { %v1073_v27 = vpop.xlane.xlu0 %1072  ;;  %v1061_v52 = vsel %vm316_vm5, %v1051_v4, %v1042_v41  ;;  %v1161_v47 = vrot.slane %v1133_v32, %v2392_v10  ;;  %v1396_v32 = vrot.slane %v1390_v2, 2 }
 0x187   :  { %v1099_v7 = vrot.slane %v1073_v27, %v2409_v25  ;;  %v2446_v31 = vsel %vm349_vm0, %v1060_v61, %v1061_v52  ;;  %v1406_v52 = vadd.f32 %v1397_v43, %v2276_v63  ;;  %v2841_v43 = vld [vmem:[#allocation11_spill] sm:$0xff] }
 0x189   :  { %v1100_v45 = vsel %vm1041_vm7, %v1099_v7, %v1095_v16  ;;  %v2489_v16 = vsub.f32 %v2467_v13, %v1379_v49  ;;  %v2528_v49 = vadd.f32 %v1396_v32, %v2300_v28 }
 0x18a   :  { %v1079_v57 = vpop.xlane.xlu0 %1078 }
 0x18b   :  { %v1108_v15 = vrot.slane %v1079_v57, %v2409_v25 }
 0x18d   :  { %v1109_v51 = vsel %vm1041_vm7, %v1108_v15, %v1104_v5  ;;  %v457_v5 = vcvt.f32.s32 %v2359_v39  ;;  %v487_v39 = vcvt.f32.s32 %v2367_v6 }
 0x18e   :  { %v1130_v14 = vpop.xlane.xlu0 %1129  ;;  %v2462_v19 = vsel %vm316_vm5, %v1109_v51, %v1100_v45  ;;  %v1409_v45 = vsub.f32 %v2492_v29, %v2489_v16  ;;  %v2510_v51 = vld [vmem:[%s2811_s5 + $0x38] sm:$0xff] }
 0x18f   :  { %v1156_v42 = vrot.slane %v1130_v14, %v2409_v25  ;;  %v1378_v14 = vrot.slane %v1372_v18, 2  ;;  %vm1267_vm10 = vcmp.ne.f32.partialorder %v2510_v51, 0.0  ;;  %v458_v35 = vshll.u32 %v457_v5, 16 }
 0x190   :  { %v1415_v3 = vrot.slane %v1409_v45, 1  ;;  %v1677_v18 = vsel %vm1267_vm10, 1.0, %v2835_v50  ;;  %vm1242_vm10 = vcmask 130048  }
 0x191   :  { %v1157_v41 = vsel %vm1041_vm7, %v1156_v42, %v1152_v62  ;;  %v1424_v62 = vsub.f32 %v1406_v52, %v2496_v40  ;;  %v443_v42 = vshll.u32 %v442_v37, 16  ;;  %v2525_v6 = vadd.f32 %v1378_v14, %v2476_v34 }
 0x192   :  { %v1136_v56 = vpop.xlane.xlu0 %1135 }
 0x193   :  { %v1165_v58 = vrot.slane %v1136_v56, %v2409_v25 }
 0x195   :  { %v1166_v48 = vsel %vm1041_vm7, %v1165_v58, %v1161_v47  ;;  %v1439_v58 = vmin.f32 %v2492_v29, %v1406_v52 }
 0x196   :  { %v2459_v9 = vsel %vm316_vm5, %v1166_v48, %v1157_v41  ;;  %v473_v41 = vshll.u32 %v472_v21, 16  ;;  %v1442_v48 = vmax.f32 %v2489_v16, %v2496_v40  ;;  %v488_v21 = vshll.u32 %v487_v39, 16 }
 0x198   :  { %v1445_v2 = vsub.f32 %v1439_v58, %v1442_v48 }
 0x1c1   :  { %v425_v30 = vpop.xlane.xlu1 %424 }
 0x1c2   :  { %v426_v61 = vcvt.f32.s32 %v425_v30 }
 0x1c4   :  { %v2479_v23 = vadd.s32 %v428_v38, %v426_v61  ;;  %v1430_v61 = vrot.slane %v1424_v62, 1 }
 0x1c5   :  { %v2482_v55 = vpop.xlane.xlu1 %1084  ;;  %v410_v22 = vpop.xlane.xlu0 %409 }
 0x1c6   :  { %vm500_vm8 = vcmp.eq.s32.totalorder %v2479_v23, %v2839_v11  ;;  %v411_v4 = vcvt.f32.s32 %v410_v22 }
 0x1c7   :  { %v1650_v27 = vsel %vm500_vm8, 1.0, %v2835_v50 }
 0x1c8   :  { %v2499_v7 = vadd.s32 %v413_v36, %v411_v4  ;;  %v569_v46 = vmul.f32 %v1650_v27, %v2271_v59  ;;  %v2840_v59 = vld [vmem:[#allocation10_spill] sm:$0xff]  ;;  %v1402_v36 = vsub.f32 %v2300_v28, %v1396_v32  ;;  %v1421_v4 = vmul.f32 %v1415_v3, %v1409_v45 }
 0x1c9   :  { %v2505_v57 = vpop.xlane.xlu1 %1141  ;;  %v440_v15 = vpop.xlane.xlu0 %439  ;;  %v1478_v27 = vmax.f32 %v2492_v29, %v1406_v52  ;;  %v1438_v32 = vmin.f32 %v2525_v6, %v2528_v49 }
 0x1ca   :  { %vm499_vm9 = vcmp.eq.s32.totalorder %v2499_v7, %v2840_v59  ;;  %v441_v47 = vcvt.f32.s32 %v440_v15  ;;  %614 = vperm.xlu1 %1686, %v569_v46   ;;  %v1481_v46 = vmin.f32 %v2489_v16, %v2496_v40  ;;  %v2842_v59 = vld [vmem:[#allocation13_spill] sm:$0xff]  ;;  %v1448_v40 = vmax.f32 %v1445_v2, 0.0 }
 0x1cb   :  { %v1649_v56 = vsel %vm499_vm9, 1.0, %v2835_v50  ;;  %v1423_v3 = vsub.f32 %v2528_v49, %v1402_v36  ;;  %vm693_vm3 = vcmp.ne.s32.totalorder %v2499_v7, 11 }
 0x1cc   :  { %v444_v8 = vadd.s32 %v443_v42, %v441_v47  ;;  %v568_v17 = vmul.f32 %v1649_v56, %v2286_v0  ;;  %v1384_v0 = vsub.f32 %v2476_v34, %v1378_v14  ;;  %v1436_v42 = vmul.f32 %v1430_v61, %v1424_v62 }
 0x1cd   :  { %v2522_v30 = vpop.xlane.xlu1 %1304  ;;  %v455_v38 = vpop.xlane.xlu0 %454  ;;  %v1484_v62 = vsub.f32 %v1478_v27, %v1481_v46  ;;  %v1454_v27 = vrot.slane %v1448_v40, 1 }
 0x1ce   :  { %vm501_vm11 = vcmp.eq.s32.totalorder %v444_v8, %v2841_v43  ;;  %v456_v37 = vcvt.f32.s32 %v455_v38  ;;  %611 = vperm.xlu0 %1685, %v568_v17   ;;  %vm695_vm12 = vcmp.ne.s32.totalorder %v444_v8, 11  ;;  %v1441_v39 = vmax.f32 %v1384_v0, %v1402_v36 }
 0x1cf   :  { %v1651_v22 = vsel %vm501_vm11, 1.0, %v2835_v50  ;;  %v1657_v52 = vsel %vm695_vm12, 1.0, %v2835_v50  ;;  %v1408_v17 = vsub.f32 %v2525_v6, %v1384_v0  ;;  %v1477_v43 = vmax.f32 %v2525_v6, %v2528_v49 }
 0x1d0   :  { %v459_v11 = vadd.s32 %v458_v35, %v456_v37  ;;  %v570_v14 = vmul.f32 %v1651_v22, %v2281_v20  ;;  %v2843_v35 = vld [vmem:[#allocation14_spill] sm:$0xff]  ;;  %v1444_v61 = vsub.f32 %v1438_v32, %v1441_v39  ;;  %v1117_v22 = vrot.slane %v2482_v55, %v2409_v25 }
 0x1d1   :  { %v485_v5 = vpop.xlane.xlu1 %484  ;;  %v470_v15 = vpop.xlane.xlu0 %469  ;;  %v1174_v32 = vrot.slane %v2505_v57, %v2409_v25  ;;  %v1289_v25 = vsel %vm1274_vm6, %v1677_v18, -inf  ;;  %v1463_v57 = vadd.f32 %v1436_v42, %v1421_v4  ;;  %v1199_v18 = vsub.f32 %v2476_v34, %v2300_v28 }
 0x1d2   :  { %vm502_vm14 = vcmp.eq.s32.totalorder %v459_v11, %v2842_v59  ;;  %vm696_vm15 = vcmp.ne.s32.totalorder %v459_v11, 11  ;;  %v486_v47 = vcvt.f32.s32 %v485_v5  ;;  %v471_v29 = vcvt.f32.s32 %v470_v15  ;;  %617 = vperm.xlu1 %1686, %v570_v14   ;;  %v2845_v5 = vld [vmem:[#allocation15_spill] sm:$0xff] }
 0x1d3   :  { %v1658_v45 = vsel %vm696_vm15, 1.0, %v2835_v50  ;;  %v1652_v16 = vsel %vm502_vm14, 1.0, %v2835_v50  ;;  %v1414_v15 = vrot.slane %v1408_v17, 1  ;;  %v1429_v14 = vrot.slane %v1423_v3, 1 }
 0x1d4   :  { %v2545_v56 = vadd.s32 %v488_v21, %v486_v47  ;;  %v571_v20 = vmul.f32 %v1652_v16, %v2291_v26  ;;  %v732_v58 = vrot.slane %v1658_v45, %v2392_v10  ;;  %v2549_v48 = vadd.s32 %v473_v41, %v471_v29  ;;  %v2844_v41 = vld [vmem:[#allocation12_spill] sm:$0xff] }
 0x1d5   :  { %v1082_v8 = vpop.xlane.xlu0 %1081  ;;  %v728_v26 = vrot.slane %v1657_v52, %v2392_v10  ;;  %v1480_v21 = vmin.f32 %v1384_v0, %v1402_v36  ;;  %v1447_v36 = vmax.f32 %v1444_v61, 0.0  ;;  %v1487_v59 = vmax.f32 %v1484_v62, 0.0 }
 0x1d6   :  { %vm504_vm1 = vcmp.eq.s32.totalorder %v2545_v56, %v2843_v35  ;;  %v1113_v38 = vrot.slane %v1082_v8, %v2392_v10  ;;  %vm503_vm2 = vcmp.eq.s32.totalorder %v2549_v48, %v2844_v41  ;;  %620 = vperm.xlu1 %1686, %v571_v20   ;;  %v2586_v16 = vmul.f32 %v1454_v27, %v1448_v40  ;;  %v2619_v27 = vld [vmem:[%s2811_s5 + $0x30] sm:$0xff] }
 0x1d7   :  { %v1654_v37 = vsel %vm504_vm1, 1.0, %v2835_v50  ;;  %v1653_v11 = vsel %vm503_vm2, 1.0, %v2835_v50  ;;  %v2568_v49 = vsel %vm316_vm5, %v732_v58, %v728_v26  ;;  %v1483_v47 = vsub.f32 %v1477_v43, %v1480_v21 }
 0x1d8   :  { %v573_v2 = vmul.f32 %v1654_v37, %v2302_v53  ;;  %v572_v6 = vmul.f32 %v1653_v11, %v2845_v5  ;;  %v1118_v55 = vsel %vm1041_vm7, %v1117_v22, %v1113_v38  ;;  %v1200_v53 = vsub.f32 %v2467_v13, %v2276_v63  ;;  %v2846_v13 = vld [vmem:[#allocation6_spill] sm:$0xff] }
 0x1d9   :  { %v1139_v46 = vpop.xlane.xlu0 %1138  ;;  %v2578_v39 = vsel %vm349_vm0, %v1118_v55, %v2462_v19  ;;  %v1420_v52 = vmul.f32 %v1414_v15, %v1408_v17  ;;  %v1435_v20 = vmul.f32 %v1429_v14, %v1423_v3  ;;  %v1453_v63 = vrot.slane %v1447_v36, 1 }
 0x1da   :  { %v1170_v0 = vrot.slane %v1139_v46, %v2392_v10  ;;  %626 = vperm.xlu1 %1686, %v573_v2   ;;  %623 = vperm.xlu0 %1685, %v572_v6   ;;  %v1212_v62 = vrot.slane %v2342_v44, %v2846_v13  ;;  %v2590_v58 = vand.u32 2147483647, %v1200_v53  ;;  %v1493_v19 = vrot.slane %v1487_v59, 1 }
 0x1db   :  { %v1486_v8 = vmax.f32 %v1483_v47, 0.0  ;;  %v1290_v35 = vrot.slane %v1289_v25, 4  ;;  %v2595_v4 = vsub.f32 %v1463_v57, %v2586_v16  ;;  %v1462_v42 = vadd.f32 %v1435_v20, %v1420_v52 }
 0x1dc   :  { %v1175_v45 = vsel %vm1041_vm7, %v1174_v32, %v1170_v0  ;;  %v1218_v40 = vmul.f32 %v1212_v62, %v2590_v58  ;;  %v2600_v17 = vmul.f32 %v1493_v19, %v1487_v59  ;;  %v1208_v38 = vrot.slane %v2380_v1, %v2846_v13 }
 0x1dd   :  { %v2584_v29 = vsel %vm349_vm0, %v1175_v45, %v2459_v9  ;;  %v2597_v9 = vmul.f32 %v1453_v63, %v1447_v36  ;;  %v1492_v3 = vrot.slane %v1486_v8, 1  ;;  %v1291_v61 = vmax.f32 %v1289_v25, %v1290_v35 }
 0x1de   :  { %vm1220_vm6 = vcmask 125952   ;;  %v2604_v43 = vand.u32 2147483647, %v1199_v18  ;;  %v1469_v28 = vadd.f32 1e-07, %v2595_v4  ;;  %v1374_v15 = vmul.f32 0.5, %v2619_v27 }
 0x1df   :  { %v2608_v34 = vsub.f32 %v1462_v42, %v2597_v9  ;;  %v1228_v26 = vsel %vm1220_vm6, %v1218_v40, 0.0  ;;  %v1505_v37 = vadd.f32 1e-07, %v2600_v17  ;;  %v2612_v41 = vmul.f32 %v1492_v3, %v1486_v8  ;;  %v2645_v42 = vld [vmem:[%s2811_s5 + $0x40] sm:$0x1]  ;;  %s1804_s5 = smov 6  }
 0x1e0   :  { %v1292_v21 = vrot.slane %v1291_v61, 2  ;;  %v1217_v22 = vmul.f32 %v1208_v38, %v2604_v43  ;;  %v1229_v2 = vrot.slane %v1228_v26, 4  ;;  %1747 = vrcp.f32 %v1469_v28 }
 0x1e1   :  { %v1468_v11 = vadd.f32 1e-07, %v2608_v34  ;;  %1749 = vrcp.f32 %v1505_v37  ;;  %v1504_v46 = vadd.f32 1e-07, %v2612_v41  ;;  %v1392_v14 = vmul.f32 0.5, %v2510_v51 }
 0x1e2   :  { %v1293_v5 = vmax.f32 %v1291_v61, %v1292_v21  ;;  %v1221_v6 = vsel %vm1220_vm6, %v1217_v22, 0.0  ;;  %vm694_vm7 = vcmp.ne.s32.totalorder %v2479_v23, 11  ;;  %v1230_v32 = vadd.f32 %v1229_v2, %v1228_v26 }
 0x1e3   :  { %1751 = vrcp.f32 %v1468_v11  ;;  %v1655_v0 = vsel %vm693_vm3, 1.0, %v2835_v50  ;;  %v1222_v36 = vrot.slane %v1221_v6, 4  ;;  %vm698_vm8 = vcmp.ne.s32.totalorder %v2545_v56, 11 }
 0x1e4   :  { %1753 = vrcp.f32 %v1504_v46  ;;  %vm697_vm9 = vcmp.ne.s32.totalorder %v2549_v48, 11  ;;  %v1294_v7 = vrot.slane %v1293_v5, 1  ;;  %v1656_v55 = vsel %vm694_vm7, 1.0, %v2835_v50 }
 0x1e5   :  { %v1380_v53 = vrot.slane %v1374_v15, 2  ;;  %v1398_v59 = vrot.slane %v1392_v14, 2  ;;  %v720_v47 = vrot.slane %v1655_v0, %v2392_v10  ;;  %v1231_v45 = vrot.slane %v1230_v32, 2 }
 0x1e6   :  { %v1660_v23 = vsel %vm698_vm8, 1.0, %v2835_v50  ;;  %v1659_v25 = vsel %vm697_vm9, 1.0, %v2835_v50  ;;  %v1223_v57 = vadd.f32 %v1222_v36, %v1221_v6  ;;  %v724_v52 = vrot.slane %v1656_v55, %v2392_v10 }
 0x1e7   :  { %v1295_v20 = vmax.f32 %v1293_v5, %v1294_v7  ;;  %v1386_v56 = vsub.f32 %v2619_v27, %v1380_v53  ;;  %v1389_v48 = vadd.f32 %v1380_v53, %v2619_v27  ;;  %v1404_v63 = vsub.f32 %v2510_v51, %v1398_v59 }
 0x1e8   :  { %v1407_v62 = vadd.f32 %v1398_v59, %v2510_v51  ;;  %v741_v19 = vsel %vm316_vm5, %v724_v52, %v720_v47  ;;  %v736_v8 = vrot.slane %v1659_v25, %v2392_v10  ;;  %v740_v35 = vrot.slane %v1660_v23, %v2392_v10 }
 0x1e9   :  { %v1232_v18 = vadd.f32 %v1231_v45, %v1230_v32  ;;  %v1224_v40 = vrot.slane %v1223_v57, 2  ;;  %v1502_v3 = vsub.f32 %v2600_v17, %v2595_v4  ;;  %v747_v61 = vsel %vm323_vm4, %v741_v19, 0.0 }
 0x1ea   :  { %v1440_v28 = vmin.f32 %v1389_v48, %v1407_v62  ;;  %v1443_v26 = vmax.f32 %v1386_v56, %v1404_v63  ;;  %v743_v37 = vsel %vm316_vm5, %v740_v35, %v736_v8  ;;  %v2652_v21 = vmul.f32 %v1295_v20, %v2645_v42 }
 0x1eb   :  { %v1233_v22 = vrot.slane %v1232_v18, 1  ;;  %v1225_v11 = vadd.f32 %v1224_v40, %v1223_v57  ;;  %v1501_v4 = vsub.f32 %v2612_v41, %v2608_v34  ;;  %v1479_v6 = vmax.f32 %v1389_v48, %v1407_v62 }
 0x1ec   :  { %v1482_v15 = vmin.f32 %v1386_v56, %v1404_v63  ;;  %v753_v14 = vsel %vm323_vm4, %v743_v37, 0.0  ;;  %v1410_v32 = vsub.f32 %v1389_v48, %v1386_v56  ;;  %v1425_v0 = vsub.f32 %v1407_v62, %v1404_v63  ;;  %v2666_v48 = vpop.xlane.xlu0 %1301 }
 0x1ed   :  { %v1748_v50 = vpop.eup %1747  ;;  %v1446_v36 = vsub.f32 %v1440_v28, %v1443_v26  ;;  %v750_v7 = vsel %vm323_vm4, %v2568_v49, 0.0  ;;  %v1306_v55 = vsel %vm1299_vm13, %v2652_v21, 0.0  ;;  %v1226_v53 = vrot.slane %v1225_v11, 1 }
 0x1ee   :  { %v1750_v38 = vpop.eup %1749  ;;  %v1475_v46 = vmul.f32 %v1748_v50, %v2586_v16  ;;  %v1234_v16 = vadd.f32 %v1233_v22, %v1232_v18  ;;  %v1485_v47 = vsub.f32 %v1479_v6, %v1482_v15  ;;  %v1416_v45 = vrot.slane %v1410_v32, 1  ;;  %v1674_v22 = vld [vmem:[#allocation2] ss:$0 sm:$0xff] }
 0x1ef   :  { %v1511_v5 = vmul.f32 %v1750_v38, %v1502_v3  ;;  %v1431_v23 = vrot.slane %v1425_v0, 1  ;;  %v1449_v25 = vmax.f32 %v1446_v36, 0.0  ;;  %v1227_v52 = vadd.f32 %v1226_v53, %v1225_v11 }
 0x1f0   :  { %v1752_v2 = vpop.eup %1751  ;;  %v1246_v57 = vsel %vm1242_vm10, %v1234_v16, 0.0  ;;  %v1488_v56 = vmax.f32 %v1485_v47, 0.0  ;;  %v1422_v63 = vmul.f32 %v1416_v45, %v1410_v32  ;;  %v1537_v18 = vrot.slane %v2384_v24, 4 }
 0x1f1   :  { %v1754_v17 = vpop.eup %1753  ;;  %v1514_v59 = vsub.f32 %v1475_v46, %v1511_v5  ;;  %v1474_v34 = vmul.f32 %v1752_v2, %v2597_v9  ;;  %v1437_v62 = vmul.f32 %v1431_v23, %v1425_v0  ;;  %v1455_v19 = vrot.slane %v1449_v25, 1  ;;  %v2681_v46 = vpop.permute.xlu1 %278 }
 0x1f2   :  { %v1510_v41 = vmul.f32 %v1754_v17, %v1501_v4  ;;  %v1243_v9 = vsel %vm1242_vm10, %v1227_v52, 0.0  ;;  %v1494_v50 = vrot.slane %v1488_v56, 1  ;;  %v1201_v38 = vsub.f32 %v2619_v27, %v2510_v51 }
 0x1f3   :  { %v2664_v49 = vsub.f32 1.0, %v1514_v59  ;;  %v1461_v40 = vmul.f32 %v1455_v19, %v1449_v25  ;;  %v1464_v3 = vadd.f32 %v1437_v62, %v1422_v63  ;;  %vm1546_vm11 = vcmask 126980  }
 0x1f4   :  { %v1513_v20 = vsub.f32 %v1474_v34, %v1510_v41  ;;  %v1500_v37 = vmul.f32 %v1494_v50, %v1488_v56  ;;  %v2679_v11 = vand.u32 2147483647, %v1201_v38  ;;  %vm352_vm12 = vcmask 10240  }
 0x1f5   :  { %v1520_v8 = vmul.f32 %v2664_v49, %v2342_v44  ;;  %v1467_v2 = vsub.f32 %v1464_v3, %v1461_v40  ;;  %v1216_v44 = vrot.slane %v2645_v42, %v2846_v13  ;;  %v282_v15 = vpop.permute.xlu1 %281  ;;  %v1538_v3 = vrot.slane %v2355_v54, 4 }
 0x1f6   :  { %v1516_v35 = vsub.f32 1.0, %v1513_v20  ;;  %v1506_v27 = vadd.f32 1e-07, %v1500_v37  ;;  %v383_v20 = vsel %vm352_vm12, %v2435_v12, 0.0  ;;  %v1539_v12 = vrot.slane %v2652_v21, 4 }
 0x1f7   :  { %v1525_v28 = vsel %vm1299_vm13, %v1520_v8, 0.0  ;;  %v1470_v17 = vadd.f32 1e-07, %v1467_v2  ;;  %v1219_v6 = vmul.f32 %v1216_v44, %v2679_v11  ;;  %v1503_v52 = vsub.f32 %v1500_v37, %v1467_v2 }
 0x1f8   :  { %v1543_v26 = vmul.f32 %v1537_v18, %v1516_v35  ;;  %v1519_v51 = vmul.f32 %v1516_v35, %v2380_v1  ;;  %1755 = vrcp.f32 %v1506_v27  ;;  %v303_v1 = vrot.slane %v282_v15, %v2392_v10 }
 0x1f9   :  { %748 = vadd.xlane.f32.xlu0 %v747_v61  ;;  %v2674_v61 = vpop.permute.xlu0 %275  ;;  %1757 = vrcp.f32 %v1470_v17  ;;  %v1235_v0 = vsel %vm1220_vm6, %v1219_v6, 0.0  ;;  %vm1064_vm14 = vcmask 124928   ;;  %vm1616_vm15 = vcmask 31744  }
 0x1fa   :  { %v1547_v5 = vsel %vm1546_vm11, %v1543_v26, 0.0  ;;  %v1236_v16 = vrot.slane %v1235_v0, 4  ;;  %vm1618_vm1 = vcmask 39936   ;;  %vm1620_vm2 = vcmask 48128  }
 0x1fb   :  { %vm1624_vm3 = vcmask 59392  }
 0x1fc   :  { %v1237_v47 = vadd.f32 %v1236_v16, %v1235_v0 }
 0x1fd   :  { %754 = vadd.xlane.f32.xlu0 %v753_v14  ;;  %v285_v4 = vpop.permute.xlu0 %284  ;;  %v1522_v14 = vsel %vm1299_vm13, %v1519_v51, 0.0 }
 0x1fe   :  { %751 = vadd.xlane.f32.xlu1 %v750_v7  ;;  %v307_v32 = vrot.slane %v285_v4, %v2392_v10  ;;  %v288_v7 = vpop.permute.xlu1 %287 }
 0x1ff   :  { %v311_v34 = vrot.slane %v288_v7, %v2392_v10 }
 0x200   :  { %v318_v59 = vsel %vm316_vm5, %v307_v32, %v303_v1 }
 0x201   :  { %1307 = vadd.xlane.f32.xlu0 %v1306_v55  ;;  %v291_v36 = vpop.permute.xlu0 %290  ;;  %v601_v55 = vsel %vm352_vm12, %v2404_v33, 0.0  ;;  %v327_v41 = vsel %vm323_vm4, %v318_v59, 0.0 }
 0x202   :  { %v315_v53 = vrot.slane %v291_v36, %v2392_v10 }
 0x204   :  { %v319_v45 = vsel %vm316_vm5, %v315_v53, %v311_v34  ;;  %v1179_v53 = vsel %vm1064_vm14, %v2584_v29, 0.0  ;;  %v1320_v29 = vrot.slane %v2652_v21, %v2846_v13 }
 0x205   :  { %1247 = vadd.xlane.f32.xlu0 %v1246_v57  ;;  %v1756_v23 = vpop.eup %1755  ;;  %v330_v25 = vsel %vm323_vm4, %v319_v45, 0.0  ;;  %v1238_v57 = vrot.slane %v1237_v47, 2  ;;  %v2736_v45 = vadd.f32 0.0001, %v2666_v48 }
 0x206   :  { %v1758_v33 = vpop.eup %1757  ;;  %v1512_v62 = vmul.f32 %v1756_v23, %v1503_v52 }
 0x207   :  { %v1239_v56 = vadd.f32 %v1238_v57, %v1237_v47  ;;  %v1476_v63 = vmul.f32 %v1758_v33, %v1461_v40  ;;  %v1312_v47 = vrot.slane %v2384_v24, %v2846_v13 }
 0x209   :  { %1244 = vadd.xlane.f32.xlu0 %v1243_v9  ;;  %v1240_v19 = vrot.slane %v1239_v56, 1  ;;  %v1515_v9 = vsub.f32 %v1476_v63, %v1512_v62  ;;  %v1321_v24 = vmul.f32 %v1312_v47, %v2604_v43 }
 0x20b   :  { %v1241_v8 = vadd.f32 %v1240_v19, %v1239_v56  ;;  %v1518_v35 = vsub.f32 1.0, %v1515_v9  ;;  %v1327_v19 = vrot.slane %v1321_v24, 4  ;;  %v1323_v9 = vmul.f32 %v1320_v29, %v2679_v11 }
 0x20d   :  { %1526 = vadd.xlane.f32.xlu0 %v1525_v28  ;;  %v1249_v18 = vsel %vm1242_vm10, %v1241_v8, 0.0  ;;  %v1521_v50 = vmul.f32 %v1518_v35, %v2645_v42  ;;  %v1544_v28 = vmul.f32 %v1538_v3, %v2664_v49  ;;  %v1545_v26 = vmul.f32 %v1539_v12, %v1518_v35 }
 0x20e   :  { %v299_v42 = vrot.slane %v2681_v46, %v2392_v10  ;;  %v1065_v49 = vsel %vm1064_vm14, %v2446_v31, 0.0  ;;  %v1329_v21 = vrot.slane %v1323_v9, 4 }
 0x20f   :  { %1258 = vbcast.lane.b32.xlu1 %v1674_v22, 256  ;;  %v1528_v38 = vsel %vm1299_vm13, %v1521_v50, 0.0  ;;  %v1550_v40 = vsel %vm1546_vm11, %v1544_v28, 0.0  ;;  %v1553_v37 = vsel %vm1546_vm11, %v1545_v26, 0.0  ;;  %v295_v22 = vrot.slane %v2674_v61, %v2392_v10 }
 0x210   :  { %vm1612_vm13 = vcmask 15360  }
 0x211   :  { %1548 = vadd.xlane.f32.xlu0 %v1547_v5  ;;  %v317_v2 = vsel %vm316_vm5, %v299_v42, %v295_v22 }
 0x212   :  { %v324_v5 = vsel %vm323_vm4, %v317_v2, 0.0 }
 0x215   :  { %1523 = vadd.xlane.f32.xlu0 %v1522_v14 }
 0x219   :  { %602 = vadd.xlane.f32.xlu0 %v601_v55 }
 0x21d   :  { %328 = vadd.xlane.f32.xlu0 %v327_v41  ;;  %v1316_v41 = vrot.slane %v2355_v54, %v2846_v13  ;;  %v1333_v13 = vsel %vm1220_vm6, %v1327_v19, 0.0 }
 0x21e   :  { %v1334_v43 = vrot.slane %v1333_v13, 4 }
 0x21f   :  { %v1322_v56 = vmul.f32 %v1316_v41, %v2590_v58 }
 0x221   :  { %331 = vadd.xlane.f32.xlu0 %v330_v25  ;;  %v1328_v62 = vrot.slane %v1322_v56, 4 }
 0x225   :  { %384 = vadd.xlane.f32.xlu0 %v383_v20  ;;  %v1559_v20 = vrot.slane %v2736_v45, 4 }
 0x227   :  { %1759 = vrcp.f32 %v1559_v20 }
 0x233   :  { %1250 = vadd.xlane.f32.xlu1 %v1249_v18  ;;  %v1347_v18 = vsel %vm1220_vm6, %v1329_v21, 0.0 }
 0x234   :  { %v1348_v28 = vrot.slane %v1347_v18, 4  ;;  %v1760_v12 = vpop.eup %1759 }
 0x236   :  { %v1349_v22 = vadd.f32 %v1348_v28, %v1347_v18 }
 0x237   :  { %1529 = vadd.xlane.f32.xlu1 %v1528_v38  ;;  %v1335_v38 = vadd.f32 %v1334_v43, %v1333_v13 }
 0x238   :  { %v1350_v2 = vrot.slane %v1349_v22, 2 }
 0x23b   :  { %1551 = vadd.xlane.f32.xlu1 %v1550_v40 }
 0x23f   :  { %1554 = vadd.xlane.f32.xlu1 %v1553_v37  ;;  %v1336_v37 = vrot.slane %v1335_v38, 2 }
 0x243   :  { %1066 = vadd.xlane.f32.xlu1 %v1065_v49  ;;  %v1337_v49 = vadd.f32 %v1336_v37, %v1335_v38 }
 0x245   :  { %v615_v44 = vpop.permute.xlu1 %614 }
 0x246   :  { %v635_v27 = vrot.slane %v615_v44, %v2392_v10 }
 0x247   :  { %325 = vadd.xlane.f32.xlu1 %v324_v5  ;;  %v1338_v5 = vrot.slane %v1337_v49, 1 }
 0x249   :  { %v612_v51 = vpop.permute.xlu0 %611 }
 0x24a   :  { %v631_v61 = vrot.slane %v612_v51, %v2392_v10  ;;  %v1351_v51 = vadd.f32 %v1350_v2, %v1349_v22 }
 0x24c   :  { %v652_v4 = vsel %vm316_vm5, %v635_v27, %v631_v61  ;;  %v1339_v61 = vadd.f32 %v1338_v5, %v1337_v49 }
 0x24d   :  { %v658_v17 = vsel %vm323_vm4, %v652_v4, 0.0  ;;  %v618_v46 = vpop.permute.xlu1 %617  ;;  %v1352_v4 = vrot.slane %v1351_v51, 1 }
 0x24e   :  { %659 = vadd.xlane.f32.xlu1 %v658_v17  ;;  %v639_v31 = vrot.slane %v618_v46, %v2392_v10  ;;  %v1122_v46 = vsel %vm1064_vm14, %v2578_v39, 0.0 }
 0x251   :  { %v621_v6 = vpop.permute.xlu1 %620 }
 0x252   :  { %v643_v15 = vrot.slane %v621_v6, %v2392_v10 }
 0x254   :  { %v653_v14 = vsel %vm316_vm5, %v643_v15, %v639_v31  ;;  %v1354_v31 = vsel %vm1242_vm10, %v1339_v61, 0.0  ;;  %v1353_v15 = vadd.f32 %v1352_v4, %v1351_v51 }
 0x255   :  { %v627_v32 = vpop.permute.xlu1 %626  ;;  %v624_v0 = vpop.permute.xlu0 %623  ;;  %v661_v36 = vsel %vm323_vm4, %v653_v14, 0.0  ;;  %v2758_v14 = vadd.f32 0.0001, %v2522_v30 }
 0x256   :  { %v651_v1 = vrot.slane %v627_v32, %v2392_v10  ;;  %v647_v7 = vrot.slane %v624_v0, %v2392_v10  ;;  %662 = vadd.xlane.f32.xlu1 %v661_v36  ;;  %v1360_v32 = vsel %vm1242_vm10, %v1353_v15, 0.0 }
 0x257   :  { %v1560_v36 = vrot.slane %v2758_v14, 4 }
 0x258   :  { %v654_v55 = vsel %vm316_vm5, %v651_v1, %v647_v7 }
 0x259   :  { %v664_v16 = vsel %vm323_vm4, %v654_v55, 0.0  ;;  %vm1610_vm4 = vcmask 7168  }
 0x25a   :  { %665 = vadd.xlane.f32.xlu1 %v664_v16 }
 0x25e   :  { %1180 = vadd.xlane.f32.xlu1 %v1179_v53 }
 0x282   :  { %v749_v59 = vpop.xlane.xlu0 %748 }
 0x283   :  { %v765_v34 = vsub.f32 %v749_v59, %v2437_v60 }
 0x285   :  { %v768_v23 = vand.u32 2147483647, %v765_v34 }
 0x286   :  { %v755_v25 = vpop.xlane.xlu0 %754 }
 0x287   :  { %v767_v57 = vsub.f32 %v755_v25, %v2437_v60  ;;  %v752_v52 = vpop.xlane.xlu1 %751  ;;  %775 = vperm.xlu1 %1686, %v768_v23  }
 0x288   :  { %v766_v33 = vsub.f32 %v752_v52, %v2437_v60  ;;  %v1340_v60 = vsel %vm1220_vm6, %v1328_v62, 0.0  ;;  %vm1622_vm6 = vcmask 56320  }
 0x289   :  { %v770_v54 = vand.u32 2147483647, %v767_v57  ;;  %v1341_v58 = vrot.slane %v1340_v60, 4 }
 0x28a   :  { %v769_v48 = vand.u32 2147483647, %v766_v33  ;;  %v1308_v63 = vpop.xlane.xlu0 %1307 }
 0x28b   :  { %781 = vperm.xlu1 %1686, %v770_v54   ;;  %v1342_v3 = vadd.f32 %v1341_v58, %v1340_v60  ;;  %v1259_v17 = vpop.permute.xlu1 %1258  ;;  %v2761_v0 = vadd.f32 0.0001, %v1308_v63 }
 0x28c   :  { %778 = vperm.xlu0 %1685, %v769_v48   ;;  %1761 = vrcp.f32 %v1259_v17 }
 0x28d   :  { %v1343_v26 = vrot.slane %v1342_v3, 2  ;;  %v1561_v39 = vrot.slane %v2761_v0, 4  ;;  %1763 = vrcp.f32 %v1560_v36 }
 0x28e   :  { %v2746_v8 = vpop.xlane.xlu0 %1247 }
 0x28f   :  { %v1344_v42 = vadd.f32 %v1343_v26, %v1342_v3  ;;  %1765 = vrcp.f32 %v1561_v39 }
 0x290   :  { %1767 = vrcp.f32 %v2758_v14 }
 0x291   :  { %v1345_v44 = vrot.slane %v1344_v42, 1  ;;  %1769 = vrcp.f32 %v2736_v45 }
 0x292   :  { %v2750_v35 = vpop.xlane.xlu0 %1244  ;;  %1771 = vrcp.f32 %v2761_v0 }
 0x293   :  { %v1346_v27 = vadd.f32 %v1345_v44, %v1344_v42 }
 0x295   :  { %v1357_v6 = vsel %vm1242_vm10, %v1346_v27, 0.0 }
 0x296   :  { %v1527_v50 = vpop.xlane.xlu0 %1526 }
 0x299   :  { %v1762_v1 = vpop.eup %1761 }
 0x29a   :  { %v1549_v40 = vpop.xlane.xlu0 %1548  ;;  %v1532_v7 = vmul.f32 %v1762_v1, %v1527_v50  ;;  %v1764_v23 = vpop.eup %1763  ;;  %v1262_v2 = vmul.f32 %v1762_v1, %v2750_v35 }
 0x29b   :  { %v1566_v11 = vmul.f32 %v1760_v12, %v1549_v40  ;;  %v1263_v40 = vmul.f32 %v1762_v1, %v2746_v8 }
 0x29c   :  { %v1592_v53 = vrot.slane %v1532_v7, 7  ;;  %v1766_v33 = vpop.eup %1765 }
 0x29d   :  { %v1602_v20 = vrot.slane %v1566_v11, 4  ;;  %v1574_v44 = vrot.slane %v1263_v40, 7  ;;  %v1768_v7 = vpop.eup %1767 }
 0x29e   :  { %v1524_v16 = vpop.xlane.xlu0 %1523 }
 0x29f   :  { %v1531_v30 = vmul.f32 %v1762_v1, %v1524_v16  ;;  %v1575_v27 = vsel %vm316_vm5, %v1574_v44, %v1262_v2 }
 0x2a1   :  { %v1593_v25 = vsel %vm316_vm5, %v1592_v53, %v1531_v30  ;;  %v1770_v53 = vpop.eup %1769 }
 0x2a2   :  { %v2765_v41 = vpop.xlane.xlu0 %602 }
 0x2a3   :  { %v689_v45 = vmax.f32 %v2765_v41, 1.0 }
 0x2a5   :  { %1773 = vrcp.f32 %v689_v45 }
 0x2a6   :  { %v329_v24 = vpop.xlane.xlu0 %328 }
 0x2a7   :  { %v343_v21 = vrot.slane %v329_v24, %v2392_v10 }
 0x2aa   :  { %v332_v60 = vpop.xlane.xlu0 %331 }
 0x2ab   :  { %1123 = vadd.xlane.f32.xlu0 %v1122_v46  ;;  %v347_v43 = vrot.slane %v332_v60, %v2392_v10 }
 0x2ae   :  { %v385_v17 = vpop.xlane.xlu0 %384 }
 0x2af   :  { %1358 = vadd.xlane.f32.xlu0 %v1357_v6  ;;  %1355 = vadd.xlane.f32.xlu1 %v1354_v31 }
 0x2b3   :  { %1361 = vadd.xlane.f32.xlu0 %v1360_v32 }
 0x2bc   :  { %v1251_v55 = vpop.xlane.xlu1 %1250 }
 0x2bd   :  { %v1264_v11 = vmul.f32 %v1762_v1, %v1251_v55 }
 0x2bf   :  { %v1576_v5 = vrot.slane %v1264_v11, 6 }
 0x2c0   :  { %v1530_v59 = vpop.xlane.xlu1 %1529 }
 0x2c1   :  { %v1533_v34 = vmul.f32 %v1762_v1, %v1530_v59  ;;  %v1577_v8 = vsel %vm349_vm0, %v1576_v5, %v1575_v27 }
 0x2c3   :  { %v1594_v47 = vrot.slane %v1533_v34, 6  ;;  %v1772_v34 = vpop.eup %1771 }
 0x2c4   :  { %v1552_v57 = vpop.xlane.xlu1 %1551 }
 0x2c5   :  { %v1568_v52 = vmul.f32 %v1764_v23, %v1552_v57  ;;  %v1595_v29 = vsel %vm349_vm0, %v1594_v47, %v1593_v25 }
 0x2c6   :  { %1596 = vrot.lane.b32.xlu1 %v1595_v29, %s1804_s5 }
 0x2c7   :  { %v1603_v54 = vrot.slane %v1568_v52, 3 }
 0x2c8   :  { %v1555_v56 = vpop.xlane.xlu1 %1554 }
 0x2c9   :  { %v1604_v48 = vsel %vm316_vm5, %v1603_v54, %v1602_v20  ;;  %v1570_v63 = vmul.f32 %v1766_v33, %v1555_v56  ;;  %v1774_v54 = vpop.eup %1773 }
 0x2cb   :  { %v1605_v62 = vrot.slane %v1570_v63, 2 }
 0x2cc   :  { %v2770_v19 = vpop.xlane.xlu1 %1066 }
 0x2cd   :  { %v1606_v9 = vsel %vm349_vm0, %v1605_v62, %v1604_v48  ;;  %v1186_v0 = vmax.f32 %v2770_v19, 1.0 }
 0x2cf   :  { %1775 = vrcp.f32 %v1186_v0 }
 0x2d0   :  { %v326_v13 = vpop.xlane.xlu1 %325  ;;  %1777 = vrcp.f32 %v385_v17 }
 0x2d1   :  { %v339_v58 = vrot.slane %v326_v13, %v2392_v10 }
 0x2d3   :  { %v348_v18 = vsel %vm316_vm5, %v343_v21, %v339_v58 }
 0x2d4   :  { %v350_v50 = vsel %vm349_vm0, %v347_v43, %v348_v18 }
 0x2d5   :  { %v353_v3 = vsel %vm352_vm12, %v350_v50, 0.0 }
 0x2d6   :  { %354 = vadd.xlane.f32.xlu0 %v353_v3 }
 0x2d7   :  { %v660_v38 = vpop.xlane.xlu1 %659 }
 0x2d8   :  { %v673_v26 = vrot.slane %v660_v38, %v2392_v10 }
 0x2dc   :  { %v1776_v63 = vpop.eup %1775 }
 0x2df   :  { %v663_v28 = vpop.xlane.xlu1 %662 }
 0x2e0   :  { %v677_v12 = vrot.slane %v663_v28, %v2392_v10 }
 0x2e2   :  { %v682_v42 = vsel %vm316_vm5, %v677_v12, %v673_v26 }
 0x2e3   :  { %v666_v37 = vpop.xlane.xlu1 %665 }
 0x2e4   :  { %v681_v22 = vrot.slane %v666_v37, %v2392_v10 }
 0x2e6   :  { %v683_v49 = vsel %vm349_vm0, %v681_v22, %v682_v42 }
 0x2e7   :  { %v685_v51 = vsel %vm352_vm12, %v683_v49, 0.0  ;;  %v1181_v61 = vpop.xlane.xlu1 %1180 }
 0x2e8   :  { %v1183_v21 = vsub.f32 0.0, %v1181_v61 }
 0x2ea   :  { %686 = vadd.xlane.f32.xlu1 %v685_v51 }
 0x2ec   :  { %1578 = vrot.lane.b32.xlu0 %v1577_v8, %s1805_s9 }
 0x302   :  { %v776_v4 = vpop.permute.xlu1 %775 }
 0x303   :  { %v786_v31 = vrot.slane %v776_v4, %v2392_v10 }
 0x306   :  { %v782_v46 = vpop.permute.xlu1 %781 }
 0x307   :  { %v779_v6 = vpop.permute.xlu0 %778  ;;  %v794_v15 = vrot.slane %v782_v46, %v2392_v10 }
 0x308   :  { %v790_v35 = vrot.slane %v779_v6, %v2392_v10 }
 0x30a   :  { %v795_v32 = vsel %vm316_vm5, %v790_v35, %v786_v31 }
 0x30b   :  { %v796_v36 = vsel %vm349_vm0, %v794_v15, %v795_v32 }
 0x30c   :  { %v798_v39 = vsel %vm352_vm12, %v796_v36, 0.0 }
 0x30d   :  { %799 = vadd.xlane.f32.xlu1 %v798_v39 }
 0x31e   :  { %1607 = vrot.lane.b32.xlu1 %v1606_v9, %s1806_s10  ;;  %v1778_v9 = vpop.eup %1777 }
 0x334   :  { %v1124_v1 = vpop.xlane.xlu0 %1123 }
 0x335   :  { %v1184_v20 = vadd.f32 %v1181_v61, %v1124_v1 }
 0x337   :  { %v1185_v24 = vsub.f32 0.0, %v1184_v20 }
 0x338   :  { %v1356_v55 = vpop.xlane.xlu1 %1355  ;;  %v1359_v16 = vpop.xlane.xlu0 %1358 }
 0x339   :  { %v1369_v10 = vmul.f32 %v1768_v7, %v1359_v16  ;;  %v1367_v30 = vmul.f32 %v1770_v53, %v1356_v55  ;;  %v1188_v60 = vmul.f32 %v1776_v63, %v1185_v24 }
 0x33b   :  { %v1584_v59 = vrot.slane %v1369_v10, 7 }
 0x33c   :  { %v1362_v47 = vpop.xlane.xlu0 %1361  ;;  %v1597_v52 = vpop.permute.xlu1 %1596 }
 0x33d   :  { %v1585_v23 = vsel %vm316_vm5, %v1584_v59, %v1367_v30  ;;  %v1371_v25 = vmul.f32 %v1772_v34, %v1362_v47  ;;  %vm1614_vm5 = vcmask 23552  }
 0x33f   :  { %v1586_v57 = vrot.slane %v1371_v25, 6 }
 0x341   :  { %v1587_v14 = vsel %vm349_vm0, %v1586_v57, %v1585_v23  ;;  %vm1182_vm0 = vcmp.eq.f32.partialorder %v2770_v19, 0.0 }
 0x342   :  { %v1189_v18 = vsel %vm1182_vm0, %v1183_v21, %v1188_v60 }
 0x35f   :  { %v355_v48 = vpop.xlane.xlu0 %354 }
 0x360   :  { %v387_v13 = vmul.f32 %v1778_v9, %v355_v48 }
 0x363   :  { %v1579_v3 = vpop.permute.xlu0 %1578 }
 0x373   :  { %v687_v29 = vpop.xlane.xlu1 %686 }
 0x374   :  { %v688_v33 = vmul.f32 100.0, %v687_v29 }
 0x376   :  { %v691_v56 = vmul.f32 %v1774_v54, %v688_v33 }
 0x378   :  { %v692_v62 = vsub.f32 100.0, %v691_v56 }
 0x37a   :  { %v1611_v43 = vsel %vm1610_vm4, %v387_v13, %v692_v62 }
 0x396   :  { %v800_v41 = vpop.xlane.xlu1 %799 }
 0x397   :  { %v802_v58 = vmul.f32 0.5, %v800_v41 }
 0x399   :  { %v1613_v50 = vsel %vm1612_vm13, %v1611_v43, %v802_v58 }
 0x39a   :  { %v1615_v38 = vsel %vm1614_vm5, %v1613_v50, %v1189_v18  ;;  %v1608_v40 = vpop.permute.xlu1 %1607 }
 0x39b   :  { %v1617_v28 = vsel %vm1616_vm15, %v1615_v38, %v1579_v3 }
 0x39c   :  { %v1619_v12 = vsel %vm1618_vm1, %v1617_v28, %v1587_v14 }
 0x39d   :  { %v1621_v11 = vsel %vm1620_vm2, %v1619_v12, %v1597_v52 }
 0x39e   :  { %v1623_v26 = vsel %vm1622_vm6, %v1621_v11, %v1608_v40 }
 0x39f   :  { %1625 = vst.msk [vmem:[#allocation3] sm:$0x7] %vm1624_vm3, %v1623_v26 }
 0x3a0   :  { %1790 = shalt.err (!%p1787_p4)
}
 0x3a1   :  { %1635 = dma.vmem_to_hbm [thread:$0]  %s1633_s12, 64, %s2813_s7, [#allocation4]  }
 0x3a2   :  { %1799 = dma.done.wait [#allocation4], 64  }
 0x3a3   :  { %1800 = vsyncadd [#allocation4], 4294967232 }
 0x3a4   :  { %1639 = vsyncpa [#allocation4], 1 }

</bundles_post_ra>
